<compile_context>
chip_gen: v7x
topology: tpu7x:2x2x1
jax: 0.10.0
libtpu: 0.0.40
codegen_flags: <defaults>
</compile_context>

<pallas_src>
import functools
import math

import jax
import jax.numpy as jnp
from jax.experimental import pallas as pl
from jax.experimental.pallas import tpu as pltpu

_NEG = -1e9
_OUT_PAD = 128   # lane-dense projection output width (real output dim is 2)


# --------------------------------------------------------------------------------------
# Kernel: one (batch element, layer) step of the encoder; projection head on last layer
# --------------------------------------------------------------------------------------

def _layer_norm(x, gamma, beta, eps=1e-5):
    mu = jnp.mean(x, axis=-1, keepdims=True)
    var = jnp.mean((x - mu) ** 2, axis=-1, keepdims=True)
    return (x - mu) * jax.lax.rsqrt(var + eps) * gamma + beta


def encoder_layer_kernel(x_ref, mask_ref, pad_ref,
                         wq_ref, bq_ref, wk_ref, bk_ref, wv_ref, bv_ref,
                         wo_ref, bo_ref, ln1g_ref, ln1b_ref,
                         w1_ref, b1_ref, w2_ref, b2_ref, ln2g_ref, ln2b_ref,
                         pw_ref, pb_ref,
                         out_ref,
                         x_scr,
                         *, nhead, attn_in_bf16):
    """Grid = (batch, layer). Activations carried across the layer axis in x_scr."""
    l = pl.program_id(1)

    @pl.when(l == 0)
    def _():
        x_scr[...] = x_ref[0]                       # load this batch element's (S, E)

    x = x_scr[...]                                  # (S, E) f32
    S, E = x.shape
    hd = E // nhead
    scale = 1.0 / math.sqrt(hd)

    # Per-batch additive mask, hoisted out of the head loop: (S,S) + broadcast (1,S).
    mask = mask_ref[...] + pad_ref[0]

    def mm(a, w):
        # MXU matmul; activations follow the weight dtype (bf16 if weights are bf16),
        # accumulation stays f32.
        return jnp.dot(a.astype(w.dtype), w, preferred_element_type=jnp.float32)

    # ---- fused, lane-dense QKV projections (contraction dim = E) ----
    q = mm(x, wq_ref[0]) + bq_ref[0]                # (S, E)
    k = mm(x, wk_ref[0]) + bk_ref[0]
    v = mm(x, wv_ref[0]) + bv_ref[0]

    mat_dt = jnp.bfloat16 if attn_in_bf16 else jnp.float32

    # ---- per-head attention (heads = static lane slices), contexts concatenated ----
    ctx_parts = []
    for h in range(nhead):                          # static unroll
        lo = h * hd
        qh = q[:, lo:lo + hd].astype(mat_dt)
        kh = k[:, lo:lo + hd].astype(mat_dt)
        vh = v[:, lo:lo + hd].astype(mat_dt)
        s = jnp.einsum('qd,kd->qk', qh, kh,
                       preferred_element_type=jnp.float32) * scale + mask
        s = s - jnp.max(s, axis=-1, keepdims=True)
        p = jnp.exp(s)
        p = p * pl.reciprocal(jnp.sum(p, axis=-1, keepdims=True), approx=True)
        ctx_parts.append(jnp.dot(p.astype(mat_dt), vh,
                                 preferred_element_type=jnp.float32))
    ctx = jnp.concatenate(ctx_parts, axis=-1)       # (S, E)

    # ---- single lane-dense output projection (contraction dim = E) ----
    attn = mm(ctx, wo_ref[0]) + bo_ref[0]

    h1 = _layer_norm(x + attn, ln1g_ref[0], ln1b_ref[0])

    # ---- feed-forward ----
    ff = jnp.maximum(mm(h1, w1_ref[0]) + b1_ref[0], 0.0)     # ReLU
    ff = mm(ff, w2_ref[0]) + b2_ref[0]

    x_new = _layer_norm(h1 + ff, ln2g_ref[0], ln2b_ref[0])
    x_scr[...] = x_new                               # carry to next layer step

    # ---- enc_mem_projection on the last layer, lane-dense (E -> 128-padded) ----
    @pl.when(l == pl.num_programs(1) - 1)
    def _():
        out_ref[0] = mm(x_new, pw_ref[...]) + pb_ref[...]


# --------------------------------------------------------------------------------------
# Wrapper: weight stacking, BlockSpecs, pallas_call
# --------------------------------------------------------------------------------------

def fused_encoder_forward(x, src_mask, pad_add, layer_params, proj_w, proj_b, nhead,
                          use_bf16_weights=False):
    """x: (B, S, E) f32, src_mask: (S, S) f32, pad_add: (B, 1, S) f32 additive.
    Returns (B, S, 2) f32."""
    B, S, E = x.shape
    L = len(layer_params)
    F = layer_params[0]["w1"].shape[1]

    stack = lambda name: jnp.stack([p[name] for p in layer_params])
    wq, wk, wv, wo = stack("wq"), stack("wk"), stack("wv"), stack("wo")   # (L, E, E)
    bq, bk, bv, bo = stack("bq"), stack("bk"), stack("bv"), stack("bo")   # (L, 1, E)
    ln1g, ln1b = stack("ln1g"), stack("ln1b")
    w1, b1 = stack("w1"), stack("b1")                                      # (L,E,F),(L,1,F)
    w2, b2 = stack("w2"), stack("b2")                                      # (L,F,E),(L,1,E)
    ln2g, ln2b = stack("ln2g"), stack("ln2b")

    # Lane-dense projection head: pad (E, 2) -> (E, 128) with zeros.
    pw = jnp.zeros((E, _OUT_PAD), jnp.float32).at[:, :2].set(proj_w)
    pb = jnp.zeros((1, _OUT_PAD), jnp.float32).at[:, :2].set(proj_b.reshape(1, 2))

    if use_bf16_weights:
        # Halves weight DMA and feeds the bf16-native MXU (v6e/v7x); attention score
        # and p@v matmuls also run with bf16 operands (f32 accumulation).
        cast = lambda a: a.astype(jnp.bfloat16)
        wq, wk, wv, wo, w1, w2, pw = map(cast, (wq, wk, wv, wo, w1, w2, pw))

    # BlockSpec helpers (last two block dims always equal the full array dims).
    def layer_spec(*tail):
        zeros = (0,) * len(tail)
        return pl.BlockSpec((1,) + tuple(tail), lambda b, l: (l,) + zeros)

    def batch_spec(*tail):
        zeros = (0,) * len(tail)
        return pl.BlockSpec((1,) + tuple(tail), lambda b, l: (b,) + zeros)

    def fixed_spec(*shape):
        zeros = (0,) * len(shape)
        return pl.BlockSpec(tuple(shape), lambda b, l: zeros)

    grid_spec = pltpu.PrefetchScalarGridSpec(
        num_scalar_prefetch=0,
        grid=(B, L),                                # batch parallel, layers streamed
        in_specs=[
            batch_spec(S, E),                       # x
            fixed_spec(S, S),                       # src_mask
            batch_spec(1, S),                       # key-padding additive row
            layer_spec(E, E), layer_spec(1, E),     # wq, bq
            layer_spec(E, E), layer_spec(1, E),     # wk, bk
            layer_spec(E, E), layer_spec(1, E),     # wv, bv
            layer_spec(E, E), layer_spec(1, E),     # wo, bo
            layer_spec(1, E), layer_spec(1, E),     # ln1g, ln1b
            layer_spec(E, F), layer_spec(1, F),     # w1, b1
            layer_spec(F, E), layer_spec(1, E),     # w2, b2
            layer_spec(1, E), layer_spec(1, E),     # ln2g, ln2b
            fixed_spec(E, _OUT_PAD),                # projection weight (padded)
            fixed_spec(1, _OUT_PAD),                # projection bias   (padded)
        ],
        out_specs=batch_spec(S, _OUT_PAD),
        scratch_shapes=[pltpu.VMEM((S, E), jnp.float32)],   # activations carried over L
    )

    kernel = functools.partial(encoder_layer_kernel, nhead=nhead,
                               attn_in_bf16=use_bf16_weights)

    out_padded = pl.pallas_call(
        kernel,
        out_shape=jax.ShapeDtypeStruct((B, S, _OUT_PAD), jnp.float32),
        grid_spec=grid_spec,
        compiler_params=pltpu.CompilerParams(
            dimension_semantics=("parallel", "arbitrary"),
            vmem_limit_bytes=32 * 1024 * 1024,
        ),
    )(x, src_mask, pad_add,
      wq, bq, wk, bk, wv, bv, wo, bo, ln1g, ln1b,
      w1, b1, w2, b2, ln2g, ln2b, pw, pb)

    return out_padded[..., :2]


# --------------------------------------------------------------------------------------
# Model glue: positional encoding, parameter init, full forward
# --------------------------------------------------------------------------------------

def positional_encoding(seq_len, emb_size):
    """PositionalEncodingIncludingOddEmbs: sinusoidal PE handling odd emb sizes."""
    pos = jnp.arange(seq_len, dtype=jnp.float32)[:, None]
    div = jnp.exp(jnp.arange(0, emb_size, 2, dtype=jnp.float32)
                  * (-math.log(10000.0) / emb_size))
    pe = jnp.zeros((seq_len, emb_size), jnp.float32)
    pe = pe.at[:, 0::2].set(jnp.sin(pos * div))
    n_odd = pe[:, 1::2].shape[1]
    pe = pe.at[:, 1::2].set(jnp.cos(pos * div)[:, :n_odd])
    return pe


def init_params(key, num_layers, emb_size, dim_feedforward):
    def dense(k, shape, scale=0.02):
        return (scale * jax.random.normal(k, shape)).astype(jnp.float32)

    layers = []
    for i in range(num_layers):
        ks = jax.random.split(jax.random.fold_in(key, i), 6)
        layers.append(dict(
            wq=dense(ks[0], (emb_size, emb_size)), bq=jnp.zeros((1, emb_size), jnp.float32),
            wk=dense(ks[1], (emb_size, emb_size)), bk=jnp.zeros((1, emb_size), jnp.float32),
            wv=dense(ks[2], (emb_size, emb_size)), bv=jnp.zeros((1, emb_size), jnp.float32),
            wo=dense(ks[3], (emb_size, emb_size)), bo=jnp.zeros((1, emb_size), jnp.float32),
            ln1g=jnp.ones((1, emb_size), jnp.float32), ln1b=jnp.zeros((1, emb_size), jnp.float32),
            w1=dense(ks[4], (emb_size, dim_feedforward)),
            b1=jnp.zeros((1, dim_feedforward), jnp.float32),
            w2=dense(ks[5], (dim_feedforward, emb_size)),
            b2=jnp.zeros((1, emb_size), jnp.float32),
            ln2g=jnp.ones((1, emb_size), jnp.float32), ln2b=jnp.zeros((1, emb_size), jnp.float32),
        ))
    kp = jax.random.fold_in(key, 10_000)
    proj_w = dense(kp, (emb_size, 2))
    proj_b = jnp.zeros((1, 2), jnp.float32)
    return dict(layers=layers, proj_w=proj_w, proj_b=proj_b)


def encoder_transformer_forward(src, src_mask, src_padding_mask, params, nhead,
                                use_bf16_weights=False):
    """src: (S, B, E) seq-first (PyTorch convention). Returns (S, B, 2)."""
    S, B, E = src.shape
    assert E % nhead == 0

    # positional encoding (dropout is identity in eval)
    pe = positional_encoding(S, E)
    src_emb = src + pe[:, None, :]

    # batch-major activations for the per-batch grid: (B, S, E)
    x = jnp.transpose(src_emb, (1, 0, 2)).astype(jnp.float32)

    # additive key-padding contribution, broadcast inside the kernel: (B, 1, S)
    pad_add = jnp.where(src_padding_mask, _NEG, 0.0).astype(jnp.float32).reshape(B, 1, S)

    out = fused_encoder_forward(x, src_mask.astype(jnp.float32), pad_add,
                                params["layers"], params["proj_w"], params["proj_b"],
                                nhead, use_bf16_weights=use_bf16_weights)   # (B, S, 2)

    return jnp.transpose(out, (1, 0, 2))                                    # (S, B, 2)


# --------------------------------------------------------------------------------------
# Demo
# --------------------------------------------------------------------------------------

if __name__ == "__main__":
    SEQ, BATCH, EMB, NHEAD, FFN, LAYERS = 8, 2, 32, 4, 64, 2

    key = jax.random.PRNGKey(0)
    k_src, k_param = jax.random.split(key)

    src = jax.random.normal(k_src, (SEQ, BATCH, EMB), jnp.float32)
    src_mask = jnp.zeros((SEQ, SEQ), jnp.float32)      # create_mask gives zeros for src
    src_padding_mask = jnp.zeros((BATCH, SEQ), dtype=bool).at[1, 6:].set(True)

    params = init_params(k_param, LAYERS, EMB, FFN)

    # use_bf16_weights=True is recommended on v6e/v7x for real model sizes (halves weight
    # DMA, bf16 MXU for all matmuls); keep False here for f32 reference numerics.
    outs = encoder_transformer_forward(src, src_mask, src_padding_mask, params, NHEAD,
                                       use_bf16_weights=False)
    outs = jax.block_until_ready(outs)

    assert outs.shape == (SEQ, BATCH, 2), outs.shape
    assert bool(jnp.all(jnp.isfinite(outs)))
    print("KERNEL_OK")
</pallas_src>

<mosaic_0001>
module attributes {stable_mosaic.version = 11 : i64} {
  func.func @encoder_layer_kernel(%arg0: i32, %arg1: i32, %arg2: memref<1x8x32xf32, #tpu.memory_space<vmem>>, %arg3: memref<8x8xf32, #tpu.memory_space<vmem>>, %arg4: memref<1x1x8xf32, #tpu.memory_space<vmem>>, %arg5: memref<1x32x32xf32, #tpu.memory_space<vmem>>, %arg6: memref<1x1x32xf32, #tpu.memory_space<vmem>>, %arg7: memref<1x32x32xf32, #tpu.memory_space<vmem>>, %arg8: memref<1x1x32xf32, #tpu.memory_space<vmem>>, %arg9: memref<1x32x32xf32, #tpu.memory_space<vmem>>, %arg10: memref<1x1x32xf32, #tpu.memory_space<vmem>>, %arg11: memref<1x32x32xf32, #tpu.memory_space<vmem>>, %arg12: memref<1x1x32xf32, #tpu.memory_space<vmem>>, %arg13: memref<1x1x32xf32, #tpu.memory_space<vmem>>, %arg14: memref<1x1x32xf32, #tpu.memory_space<vmem>>, %arg15: memref<1x32x64xf32, #tpu.memory_space<vmem>>, %arg16: memref<1x1x64xf32, #tpu.memory_space<vmem>>, %arg17: memref<1x64x32xf32, #tpu.memory_space<vmem>>, %arg18: memref<1x1x32xf32, #tpu.memory_space<vmem>>, %arg19: memref<1x1x32xf32, #tpu.memory_space<vmem>>, %arg20: memref<1x1x32xf32, #tpu.memory_space<vmem>>, %arg21: memref<32x128xf32, #tpu.memory_space<vmem>>, %arg22: memref<1x128xf32, #tpu.memory_space<vmem>>, %arg23: memref<1x8x128xf32, #tpu.memory_space<vmem>>, %arg24: memref<8x32xf32, #tpu.memory_space<vmem>>) attributes {dimension_semantics = [#tpu.dimension_semantics<parallel>, #tpu.dimension_semantics<arbitrary>], iteration_bounds = array<i64: 2, 2>, scalar_prefetch = 0 : i64, scratch_operands = 1 : i64, tpu.core_type = #tpu.core_type<tc>, window_params = [{transform_indices = @transform_0, window_bounds = array<i64: 1, 8, 32>}, {pipeline_mode = #tpu.pipeline_mode<synchronous>, transform_indices = @transform_1, window_bounds = array<i64: 8, 8>}, {transform_indices = @transform_2, window_bounds = array<i64: 1, 1, 8>}, {transform_indices = @transform_3, window_bounds = array<i64: 1, 32, 32>}, {transform_indices = @transform_4, window_bounds = array<i64: 1, 1, 32>}, {transform_indices = @transform_5, window_bounds = array<i64: 1, 32, 32>}, {transform_indices = @transform_6, window_bounds = array<i64: 1, 1, 32>}, {transform_indices = @transform_7, window_bounds = array<i64: 1, 32, 32>}, {transform_indices = @transform_8, window_bounds = array<i64: 1, 1, 32>}, {transform_indices = @transform_9, window_bounds = array<i64: 1, 32, 32>}, {transform_indices = @transform_10, window_bounds = array<i64: 1, 1, 32>}, {transform_indices = @transform_11, window_bounds = array<i64: 1, 1, 32>}, {transform_indices = @transform_12, window_bounds = array<i64: 1, 1, 32>}, {transform_indices = @transform_13, window_bounds = array<i64: 1, 32, 64>}, {transform_indices = @transform_14, window_bounds = array<i64: 1, 1, 64>}, {transform_indices = @transform_15, window_bounds = array<i64: 1, 64, 32>}, {transform_indices = @transform_16, window_bounds = array<i64: 1, 1, 32>}, {transform_indices = @transform_17, window_bounds = array<i64: 1, 1, 32>}, {transform_indices = @transform_18, window_bounds = array<i64: 1, 1, 32>}, {pipeline_mode = #tpu.pipeline_mode<synchronous>, transform_indices = @transform_19, window_bounds = array<i64: 32, 128>}, {pipeline_mode = #tpu.pipeline_mode<synchronous>, transform_indices = @transform_20, window_bounds = array<i64: 1, 128>}, {transform_indices = @transform_21, window_bounds = array<i64: 1, 8, 128>}]} {
    %c0_i32 = arith.constant 0 : i32
    %0 = arith.cmpi eq, %arg1, %c0_i32 : i32
    %1 = arith.extui %0 : i1 to i32
    %c0_i32_0 = arith.constant 0 : i32
    %2 = arith.cmpi ne, %1, %c0_i32_0 : i32
    scf.if %2 {
      %c0_94 = arith.constant 0 : index
      %c0_95 = arith.constant 0 : index
      %c0_96 = arith.constant 0 : index
      %184 = vector.load %arg2[%c0_94, %c0_95, %c0_96] : memref<1x8x32xf32, #tpu.memory_space<vmem>>, vector<1x8x32xf32>
      %185 = vector.shape_cast %184 : vector<1x8x32xf32> to vector<8x32xf32>
      %c0_97 = arith.constant 0 : index
      %c0_98 = arith.constant 0 : index
      %186 = vector.load %arg24[%c0_97, %c0_98] : memref<8x32xf32, #tpu.memory_space<vmem>>, vector<8x32xf32>
      tpu.vector_store %arg24[%c0_97, %c0_98], %185 {strides = array<i32>} : memref<8x32xf32, #tpu.memory_space<vmem>>, vector<8x32xf32>,
    } else {
    }
    %c0 = arith.constant 0 : index
    %c0_1 = arith.constant 0 : index
    %3 = vector.load %arg24[%c0, %c0_1] : memref<8x32xf32, #tpu.memory_space<vmem>>, vector<8x32xf32>
    %c0_2 = arith.constant 0 : index
    %c0_3 = arith.constant 0 : index
    %4 = vector.load %arg3[%c0_2, %c0_3] : memref<8x8xf32, #tpu.memory_space<vmem>>, vector<8x8xf32>
    %c0_4 = arith.constant 0 : index
    %c0_5 = arith.constant 0 : index
    %c0_6 = arith.constant 0 : index
    %5 = vector.load %arg4[%c0_4, %c0_5, %c0_6] : memref<1x1x8xf32, #tpu.memory_space<vmem>>, vector<1x1x8xf32>
    %6 = vector.shape_cast %5 : vector<1x1x8xf32> to vector<1x8xf32>
    %7 = vector.broadcast %6 : vector<1x8xf32> to vector<8x8xf32>
    %8 = arith.addf %4, %7 : vector<8x8xf32>
    %c0_7 = arith.constant 0 : index
    %c0_8 = arith.constant 0 : index
    %c0_9 = arith.constant 0 : index
    %9 = vector.load %arg5[%c0_7, %c0_8, %c0_9] : memref<1x32x32xf32, #tpu.memory_space<vmem>>, vector<1x32x32xf32>
    %10 = vector.shape_cast %9 : vector<1x32x32xf32> to vector<32x32xf32>
    %cst = arith.constant dense<0.000000e+00> : vector<8x32xf32>
    %11 = tpu.matmul %3, %10, %cst {dimension_numbers = #tpu.dot_dimension_numbers<[1], [0], [0], [1], [0, 0, 1, 1], [], []>} : vector<8x32xf32>, vector<32x32xf32>, vector<8x32xf32> -> vector<8x32xf32>
    %c0_10 = arith.constant 0 : index
    %c0_11 = arith.constant 0 : index
    %c0_12 = arith.constant 0 : index
    %12 = vector.load %arg6[%c0_10, %c0_11, %c0_12] : memref<1x1x32xf32, #tpu.memory_space<vmem>>, vector<1x1x32xf32>
    %13 = vector.shape_cast %12 : vector<1x1x32xf32> to vector<1x32xf32>
    %14 = vector.broadcast %13 : vector<1x32xf32> to vector<8x32xf32>
    %15 = arith.addf %11, %14 : vector<8x32xf32>
    %c0_13 = arith.constant 0 : index
    %c0_14 = arith.constant 0 : index
    %c0_15 = arith.constant 0 : index
    %16 = vector.load %arg7[%c0_13, %c0_14, %c0_15] : memref<1x32x32xf32, #tpu.memory_space<vmem>>, vector<1x32x32xf32>
    %17 = vector.shape_cast %16 : vector<1x32x32xf32> to vector<32x32xf32>
    %cst_16 = arith.constant dense<0.000000e+00> : vector<8x32xf32>
    %18 = tpu.matmul %3, %17, %cst_16 {dimension_numbers = #tpu.dot_dimension_numbers<[1], [0], [0], [1], [0, 0, 1, 1], [], []>} : vector<8x32xf32>, vector<32x32xf32>, vector<8x32xf32> -> vector<8x32xf32>
    %c0_17 = arith.constant 0 : index
    %c0_18 = arith.constant 0 : index
    %c0_19 = arith.constant 0 : index
    %19 = vector.load %arg8[%c0_17, %c0_18, %c0_19] : memref<1x1x32xf32, #tpu.memory_space<vmem>>, vector<1x1x32xf32>
    %20 = vector.shape_cast %19 : vector<1x1x32xf32> to vector<1x32xf32>
    %21 = vector.broadcast %20 : vector<1x32xf32> to vector<8x32xf32>
    %22 = arith.addf %18, %21 : vector<8x32xf32>
    %c0_20 = arith.constant 0 : index
    %c0_21 = arith.constant 0 : index
    %c0_22 = arith.constant 0 : index
    %23 = vector.load %arg9[%c0_20, %c0_21, %c0_22] : memref<1x32x32xf32, #tpu.memory_space<vmem>>, vector<1x32x32xf32>
    %24 = vector.shape_cast %23 : vector<1x32x32xf32> to vector<32x32xf32>
    %cst_23 = arith.constant dense<0.000000e+00> : vector<8x32xf32>
    %25 = tpu.matmul %3, %24, %cst_23 {dimension_numbers = #tpu.dot_dimension_numbers<[1], [0], [0], [1], [0, 0, 1, 1], [], []>} : vector<8x32xf32>, vector<32x32xf32>, vector<8x32xf32> -> vector<8x32xf32>
    %c0_24 = arith.constant 0 : index
    %c0_25 = arith.constant 0 : index
    %c0_26 = arith.constant 0 : index
    %26 = vector.load %arg10[%c0_24, %c0_25, %c0_26] : memref<1x1x32xf32, #tpu.memory_space<vmem>>, vector<1x1x32xf32>
    %27 = vector.shape_cast %26 : vector<1x1x32xf32> to vector<1x32xf32>
    %28 = vector.broadcast %27 : vector<1x32xf32> to vector<8x32xf32>
    %29 = arith.addf %25, %28 : vector<8x32xf32>
    %30 = vector.extract_strided_slice %15 {offsets = [0, 0], sizes = [8, 8], strides = [1, 1]} : vector<8x32xf32> to vector<8x8xf32>
    %31 = vector.extract_strided_slice %22 {offsets = [0, 0], sizes = [8, 8], strides = [1, 1]} : vector<8x32xf32> to vector<8x8xf32>
    %32 = vector.extract_strided_slice %29 {offsets = [0, 0], sizes = [8, 8], strides = [1, 1]} : vector<8x32xf32> to vector<8x8xf32>
    "tpu.trace_start"() <{level = 10 : i32, message = "qd,kd->qk"}> : () -> ()
    %cst_27 = arith.constant dense<0.000000e+00> : vector<8x8xf32>
    %33 = tpu.matmul %30, %31, %cst_27 {dimension_numbers = #tpu.dot_dimension_numbers<[1], [1], [0], [0], [0, 0, 1, 0], [], []>} : vector<8x8xf32>, vector<8x8xf32>, vector<8x8xf32> -> vector<8x8xf32>
    "tpu.trace_stop"() : () -> ()
    %cst_28 = arith.constant 0.353553385 : f32
    %34 = vector.broadcast %cst_28 : f32 to vector<8x8xf32>
    %35 = arith.mulf %33, %34 : vector<8x8xf32>
    %36 = arith.addf %35, %8 : vector<8x8xf32>
    %cst_29 = arith.constant dense<0xFF800000> : vector<8xf32>
    %37 = vector.multi_reduction <maximumf>, %36, %cst_29 [1] : vector<8x8xf32> to vector<8xf32>
    %38 = vector.shape_cast %37 : vector<8xf32> to vector<8x1xf32>
    %39 = vector.broadcast %38 : vector<8x1xf32> to vector<8x8xf32>
    %40 = arith.subf %36, %39 : vector<8x8xf32>
    %41 = math.exp %40 : vector<8x8xf32>
    %cst_30 = arith.constant dense<0.000000e+00> : vector<8xf32>
    %42 = vector.multi_reduction <add>, %41, %cst_30 [1] : vector<8x8xf32> to vector<8xf32>
    %43 = vector.shape_cast %42 : vector<8xf32> to vector<8x1xf32>
    %44 = tpu.reciprocal %43 {approx = true} : vector<8x1xf32> -> vector<8x1xf32>
    %45 = vector.broadcast %44 : vector<8x1xf32> to vector<8x8xf32>
    %46 = arith.mulf %41, %45 : vector<8x8xf32>
    %cst_31 = arith.constant dense<0.000000e+00> : vector<8x8xf32>
    %47 = tpu.matmul %46, %32, %cst_31 {dimension_numbers = #tpu.dot_dimension_numbers<[1], [0], [0], [1], [0, 0, 1, 1], [], []>} : vector<8x8xf32>, vector<8x8xf32>, vector<8x8xf32> -> vector<8x8xf32>
    %48 = vector.extract_strided_slice %15 {offsets = [0, 8], sizes = [8, 8], strides = [1, 1]} : vector<8x32xf32> to vector<8x8xf32>
    %49 = vector.extract_strided_slice %22 {offsets = [0, 8], sizes = [8, 8], strides = [1, 1]} : vector<8x32xf32> to vector<8x8xf32>
    %50 = vector.extract_strided_slice %29 {offsets = [0, 8], sizes = [8, 8], strides = [1, 1]} : vector<8x32xf32> to vector<8x8xf32>
    "tpu.trace_start"() <{level = 10 : i32, message = "qd,kd->qk"}> : () -> ()
    %cst_32 = arith.constant dense<0.000000e+00> : vector<8x8xf32>
    %51 = tpu.matmul %48, %49, %cst_32 {dimension_numbers = #tpu.dot_dimension_numbers<[1], [1], [0], [0], [0, 0, 1, 0], [], []>} : vector<8x8xf32>, vector<8x8xf32>, vector<8x8xf32> -> vector<8x8xf32>
    "tpu.trace_stop"() : () -> ()
    %cst_33 = arith.constant 0.353553385 : f32
    %52 = vector.broadcast %cst_33 : f32 to vector<8x8xf32>
    %53 = arith.mulf %51, %52 : vector<8x8xf32>
    %54 = arith.addf %53, %8 : vector<8x8xf32>
    %cst_34 = arith.constant dense<0xFF800000> : vector<8xf32>
    %55 = vector.multi_reduction <maximumf>, %54, %cst_34 [1] : vector<8x8xf32> to vector<8xf32>
    %56 = vector.shape_cast %55 : vector<8xf32> to vector<8x1xf32>
    %57 = vector.broadcast %56 : vector<8x1xf32> to vector<8x8xf32>
    %58 = arith.subf %54, %57 : vector<8x8xf32>
    %59 = math.exp %58 : vector<8x8xf32>
    %cst_35 = arith.constant dense<0.000000e+00> : vector<8xf32>
    %60 = vector.multi_reduction <add>, %59, %cst_35 [1] : vector<8x8xf32> to vector<8xf32>
    %61 = vector.shape_cast %60 : vector<8xf32> to vector<8x1xf32>
    %62 = tpu.reciprocal %61 {approx = true} : vector<8x1xf32> -> vector<8x1xf32>
    %63 = vector.broadcast %62 : vector<8x1xf32> to vector<8x8xf32>
    %64 = arith.mulf %59, %63 : vector<8x8xf32>
    %cst_36 = arith.constant dense<0.000000e+00> : vector<8x8xf32>
    %65 = tpu.matmul %64, %50, %cst_36 {dimension_numbers = #tpu.dot_dimension_numbers<[1], [0], [0], [1], [0, 0, 1, 1], [], []>} : vector<8x8xf32>, vector<8x8xf32>, vector<8x8xf32> -> vector<8x8xf32>
    %66 = vector.extract_strided_slice %15 {offsets = [0, 16], sizes = [8, 8], strides = [1, 1]} : vector<8x32xf32> to vector<8x8xf32>
    %67 = vector.extract_strided_slice %22 {offsets = [0, 16], sizes = [8, 8], strides = [1, 1]} : vector<8x32xf32> to vector<8x8xf32>
    %68 = vector.extract_strided_slice %29 {offsets = [0, 16], sizes = [8, 8], strides = [1, 1]} : vector<8x32xf32> to vector<8x8xf32>
    "tpu.trace_start"() <{level = 10 : i32, message = "qd,kd->qk"}> : () -> ()
    %cst_37 = arith.constant dense<0.000000e+00> : vector<8x8xf32>
    %69 = tpu.matmul %66, %67, %cst_37 {dimension_numbers = #tpu.dot_dimension_numbers<[1], [1], [0], [0], [0, 0, 1, 0], [], []>} : vector<8x8xf32>, vector<8x8xf32>, vector<8x8xf32> -> vector<8x8xf32>
    "tpu.trace_stop"() : () -> ()
    %cst_38 = arith.constant 0.353553385 : f32
    %70 = vector.broadcast %cst_38 : f32 to vector<8x8xf32>
    %71 = arith.mulf %69, %70 : vector<8x8xf32>
    %72 = arith.addf %71, %8 : vector<8x8xf32>
    %cst_39 = arith.constant dense<0xFF800000> : vector<8xf32>
    %73 = vector.multi_reduction <maximumf>, %72, %cst_39 [1] : vector<8x8xf32> to vector<8xf32>
    %74 = vector.shape_cast %73 : vector<8xf32> to vector<8x1xf32>
    %75 = vector.broadcast %74 : vector<8x1xf32> to vector<8x8xf32>
    %76 = arith.subf %72, %75 : vector<8x8xf32>
    %77 = math.exp %76 : vector<8x8xf32>
    %cst_40 = arith.constant dense<0.000000e+00> : vector<8xf32>
    %78 = vector.multi_reduction <add>, %77, %cst_40 [1] : vector<8x8xf32> to vector<8xf32>
    %79 = vector.shape_cast %78 : vector<8xf32> to vector<8x1xf32>
    %80 = tpu.reciprocal %79 {approx = true} : vector<8x1xf32> -> vector<8x1xf32>
    %81 = vector.broadcast %80 : vector<8x1xf32> to vector<8x8xf32>
    %82 = arith.mulf %77, %81 : vector<8x8xf32>
    %cst_41 = arith.constant dense<0.000000e+00> : vector<8x8xf32>
    %83 = tpu.matmul %82, %68, %cst_41 {dimension_numbers = #tpu.dot_dimension_numbers<[1], [0], [0], [1], [0, 0, 1, 1], [], []>} : vector<8x8xf32>, vector<8x8xf32>, vector<8x8xf32> -> vector<8x8xf32>
    %84 = vector.extract_strided_slice %15 {offsets = [0, 24], sizes = [8, 8], strides = [1, 1]} : vector<8x32xf32> to vector<8x8xf32>
    %85 = vector.extract_strided_slice %22 {offsets = [0, 24], sizes = [8, 8], strides = [1, 1]} : vector<8x32xf32> to vector<8x8xf32>
    %86 = vector.extract_strided_slice %29 {offsets = [0, 24], sizes = [8, 8], strides = [1, 1]} : vector<8x32xf32> to vector<8x8xf32>
    "tpu.trace_start"() <{level = 10 : i32, message = "qd,kd->qk"}> : () -> ()
    %cst_42 = arith.constant dense<0.000000e+00> : vector<8x8xf32>
    %87 = tpu.matmul %84, %85, %cst_42 {dimension_numbers = #tpu.dot_dimension_numbers<[1], [1], [0], [0], [0, 0, 1, 0], [], []>} : vector<8x8xf32>, vector<8x8xf32>, vector<8x8xf32> -> vector<8x8xf32>
    "tpu.trace_stop"() : () -> ()
    %cst_43 = arith.constant 0.353553385 : f32
    %88 = vector.broadcast %cst_43 : f32 to vector<8x8xf32>
    %89 = arith.mulf %87, %88 : vector<8x8xf32>
    %90 = arith.addf %89, %8 : vector<8x8xf32>
    %cst_44 = arith.constant dense<0xFF800000> : vector<8xf32>
    %91 = vector.multi_reduction <maximumf>, %90, %cst_44 [1] : vector<8x8xf32> to vector<8xf32>
    %92 = vector.shape_cast %91 : vector<8xf32> to vector<8x1xf32>
    %93 = vector.broadcast %92 : vector<8x1xf32> to vector<8x8xf32>
    %94 = arith.subf %90, %93 : vector<8x8xf32>
    %95 = math.exp %94 : vector<8x8xf32>
    %cst_45 = arith.constant dense<0.000000e+00> : vector<8xf32>
    %96 = vector.multi_reduction <add>, %95, %cst_45 [1] : vector<8x8xf32> to vector<8xf32>
    %97 = vector.shape_cast %96 : vector<8xf32> to vector<8x1xf32>
    %98 = tpu.reciprocal %97 {approx = true} : vector<8x1xf32> -> vector<8x1xf32>
    %99 = vector.broadcast %98 : vector<8x1xf32> to vector<8x8xf32>
    %100 = arith.mulf %95, %99 : vector<8x8xf32>
    %cst_46 = arith.constant dense<0.000000e+00> : vector<8x8xf32>
    %101 = tpu.matmul %100, %86, %cst_46 {dimension_numbers = #tpu.dot_dimension_numbers<[1], [0], [0], [1], [0, 0, 1, 1], [], []>} : vector<8x8xf32>, vector<8x8xf32>, vector<8x8xf32> -> vector<8x8xf32>
    %102 = tpu.concatenate %47, %65, %83, %101 in 1 : vector<8x8xf32>, vector<8x8xf32>, vector<8x8xf32>, vector<8x8xf32> -> vector<8x32xf32>
    %c0_47 = arith.constant 0 : index
    %c0_48 = arith.constant 0 : index
    %c0_49 = arith.constant 0 : index
    %103 = vector.load %arg11[%c0_47, %c0_48, %c0_49] : memref<1x32x32xf32, #tpu.memory_space<vmem>>, vector<1x32x32xf32>
    %104 = vector.shape_cast %103 : vector<1x32x32xf32> to vector<32x32xf32>
    %cst_50 = arith.constant dense<0.000000e+00> : vector<8x32xf32>
    %105 = tpu.matmul %102, %104, %cst_50 {dimension_numbers = #tpu.dot_dimension_numbers<[1], [0], [0], [1], [0, 0, 1, 1], [], []>} : vector<8x32xf32>, vector<32x32xf32>, vector<8x32xf32> -> vector<8x32xf32>
    %c0_51 = arith.constant 0 : index
    %c0_52 = arith.constant 0 : index
    %c0_53 = arith.constant 0 : index
    %106 = vector.load %arg12[%c0_51, %c0_52, %c0_53] : memref<1x1x32xf32, #tpu.memory_space<vmem>>, vector<1x1x32xf32>
    %107 = vector.shape_cast %106 : vector<1x1x32xf32> to vector<1x32xf32>
    %108 = vector.broadcast %107 : vector<1x32xf32> to vector<8x32xf32>
    %109 = arith.addf %105, %108 : vector<8x32xf32>
    %110 = arith.addf %3, %109 : vector<8x32xf32>
    %c0_54 = arith.constant 0 : index
    %c0_55 = arith.constant 0 : index
    %c0_56 = arith.constant 0 : index
    %111 = vector.load %arg13[%c0_54, %c0_55, %c0_56] : memref<1x1x32xf32, #tpu.memory_space<vmem>>, vector<1x1x32xf32>
    %112 = vector.shape_cast %111 : vector<1x1x32xf32> to vector<1x32xf32>
    %c0_57 = arith.constant 0 : index
    %c0_58 = arith.constant 0 : index
    %c0_59 = arith.constant 0 : index
    %113 = vector.load %arg14[%c0_57, %c0_58, %c0_59] : memref<1x1x32xf32, #tpu.memory_space<vmem>>, vector<1x1x32xf32>
    %114 = vector.shape_cast %113 : vector<1x1x32xf32> to vector<1x32xf32>
    %cst_60 = arith.constant dense<0.000000e+00> : vector<8xf32>
    %115 = vector.multi_reduction <add>, %110, %cst_60 [1] : vector<8x32xf32> to vector<8xf32>
    %116 = vector.shape_cast %115 : vector<8xf32> to vector<8x1xf32>
    %cst_61 = arith.constant 3.200000e+01 : f32
    %117 = vector.broadcast %cst_61 : f32 to vector<8x1xf32>
    %118 = arith.divf %116, %117 : vector<8x1xf32>
    %119 = vector.broadcast %118 : vector<8x1xf32> to vector<8x32xf32>
    %120 = arith.subf %110, %119 : vector<8x32xf32>
    %121 = arith.mulf %120, %120 : vector<8x32xf32>
    %cst_62 = arith.constant dense<0.000000e+00> : vector<8xf32>
    %122 = vector.multi_reduction <add>, %121, %cst_62 [1] : vector<8x32xf32> to vector<8xf32>
    %123 = vector.shape_cast %122 : vector<8xf32> to vector<8x1xf32>
    %cst_63 = arith.constant 3.200000e+01 : f32
    %124 = vector.broadcast %cst_63 : f32 to vector<8x1xf32>
    %125 = arith.divf %123, %124 : vector<8x1xf32>
    %126 = vector.broadcast %118 : vector<8x1xf32> to vector<8x32xf32>
    %127 = arith.subf %110, %126 : vector<8x32xf32>
    %cst_64 = arith.constant 9.99999974E-6 : f32
    %128 = vector.broadcast %cst_64 : f32 to vector<8x1xf32>
    %129 = arith.addf %125, %128 : vector<8x1xf32>
    %130 = math.rsqrt %129 : vector<8x1xf32>
    %131 = vector.broadcast %130 : vector<8x1xf32> to vector<8x32xf32>
    %132 = arith.mulf %127, %131 : vector<8x32xf32>
    %133 = vector.broadcast %112 : vector<1x32xf32> to vector<8x32xf32>
    %134 = arith.mulf %132, %133 : vector<8x32xf32>
    %135 = vector.broadcast %114 : vector<1x32xf32> to vector<8x32xf32>
    %136 = arith.addf %134, %135 : vector<8x32xf32>
    %c0_65 = arith.constant 0 : index
    %c0_66 = arith.constant 0 : index
    %c0_67 = arith.constant 0 : index
    %137 = vector.load %arg15[%c0_65, %c0_66, %c0_67] : memref<1x32x64xf32, #tpu.memory_space<vmem>>, vector<1x32x64xf32>
    %138 = vector.shape_cast %137 : vector<1x32x64xf32> to vector<32x64xf32>
    %cst_68 = arith.constant dense<0.000000e+00> : vector<8x64xf32>
    %139 = tpu.matmul %136, %138, %cst_68 {dimension_numbers = #tpu.dot_dimension_numbers<[1], [0], [0], [1], [0, 0, 1, 1], [], []>} : vector<8x32xf32>, vector<32x64xf32>, vector<8x64xf32> -> vector<8x64xf32>
    %c0_69 = arith.constant 0 : index
    %c0_70 = arith.constant 0 : index
    %c0_71 = arith.constant 0 : index
    %140 = vector.load %arg16[%c0_69, %c0_70, %c0_71] : memref<1x1x64xf32, #tpu.memory_space<vmem>>, vector<1x1x64xf32>
    %141 = vector.shape_cast %140 : vector<1x1x64xf32> to vector<1x64xf32>
    %142 = vector.broadcast %141 : vector<1x64xf32> to vector<8x64xf32>
    %143 = arith.addf %139, %142 : vector<8x64xf32>
    %cst_72 = arith.constant 0.000000e+00 : f32
    %144 = vector.broadcast %cst_72 : f32 to vector<8x64xf32>
    %145 = arith.maximumf %143, %144 : vector<8x64xf32>
    %c0_73 = arith.constant 0 : index
    %c0_74 = arith.constant 0 : index
    %c0_75 = arith.constant 0 : index
    %146 = vector.load %arg17[%c0_73, %c0_74, %c0_75] : memref<1x64x32xf32, #tpu.memory_space<vmem>>, vector<1x64x32xf32>
    %147 = vector.shape_cast %146 : vector<1x64x32xf32> to vector<64x32xf32>
    %cst_76 = arith.constant dense<0.000000e+00> : vector<8x32xf32>
    %148 = tpu.matmul %145, %147, %cst_76 {dimension_numbers = #tpu.dot_dimension_numbers<[1], [0], [0], [1], [0, 0, 1, 1], [], []>} : vector<8x64xf32>, vector<64x32xf32>, vector<8x32xf32> -> vector<8x32xf32>
    %c0_77 = arith.constant 0 : index
    %c0_78 = arith.constant 0 : index
    %c0_79 = arith.constant 0 : index
    %149 = vector.load %arg18[%c0_77, %c0_78, %c0_79] : memref<1x1x32xf32, #tpu.memory_space<vmem>>, vector<1x1x32xf32>
    %150 = vector.shape_cast %149 : vector<1x1x32xf32> to vector<1x32xf32>
    %151 = vector.broadcast %150 : vector<1x32xf32> to vector<8x32xf32>
    %152 = arith.addf %148, %151 : vector<8x32xf32>
    %153 = arith.addf %136, %152 : vector<8x32xf32>
    %c0_80 = arith.constant 0 : index
    %c0_81 = arith.constant 0 : index
    %c0_82 = arith.constant 0 : index
    %154 = vector.load %arg19[%c0_80, %c0_81, %c0_82] : memref<1x1x32xf32, #tpu.memory_space<vmem>>, vector<1x1x32xf32>
    %155 = vector.shape_cast %154 : vector<1x1x32xf32> to vector<1x32xf32>
    %c0_83 = arith.constant 0 : index
    %c0_84 = arith.constant 0 : index
    %c0_85 = arith.constant 0 : index
    %156 = vector.load %arg20[%c0_83, %c0_84, %c0_85] : memref<1x1x32xf32, #tpu.memory_space<vmem>>, vector<1x1x32xf32>
    %157 = vector.shape_cast %156 : vector<1x1x32xf32> to vector<1x32xf32>
    %cst_86 = arith.constant dense<0.000000e+00> : vector<8xf32>
    %158 = vector.multi_reduction <add>, %153, %cst_86 [1] : vector<8x32xf32> to vector<8xf32>
    %159 = vector.shape_cast %158 : vector<8xf32> to vector<8x1xf32>
    %cst_87 = arith.constant 3.200000e+01 : f32
    %160 = vector.broadcast %cst_87 : f32 to vector<8x1xf32>
    %161 = arith.divf %159, %160 : vector<8x1xf32>
    %162 = vector.broadcast %161 : vector<8x1xf32> to vector<8x32xf32>
    %163 = arith.subf %153, %162 : vector<8x32xf32>
    %164 = arith.mulf %163, %163 : vector<8x32xf32>
    %cst_88 = arith.constant dense<0.000000e+00> : vector<8xf32>
    %165 = vector.multi_reduction <add>, %164, %cst_88 [1] : vector<8x32xf32> to vector<8xf32>
    %166 = vector.shape_cast %165 : vector<8xf32> to vector<8x1xf32>
    %cst_89 = arith.constant 3.200000e+01 : f32
    %167 = vector.broadcast %cst_89 : f32 to vector<8x1xf32>
    %168 = arith.divf %166, %167 : vector<8x1xf32>
    %169 = vector.broadcast %161 : vector<8x1xf32> to vector<8x32xf32>
    %170 = arith.subf %153, %169 : vector<8x32xf32>
    %cst_90 = arith.constant 9.99999974E-6 : f32
    %171 = vector.broadcast %cst_90 : f32 to vector<8x1xf32>
    %172 = arith.addf %168, %171 : vector<8x1xf32>
    %173 = math.rsqrt %172 : vector<8x1xf32>
    %174 = vector.broadcast %173 : vector<8x1xf32> to vector<8x32xf32>
    %175 = arith.mulf %170, %174 : vector<8x32xf32>
    %176 = vector.broadcast %155 : vector<1x32xf32> to vector<8x32xf32>
    %177 = arith.mulf %175, %176 : vector<8x32xf32>
    %178 = vector.broadcast %157 : vector<1x32xf32> to vector<8x32xf32>
    %179 = arith.addf %177, %178 : vector<8x32xf32>
    %c0_91 = arith.constant 0 : index
    %c0_92 = arith.constant 0 : index
    %180 = vector.load %arg24[%c0_91, %c0_92] : memref<8x32xf32, #tpu.memory_space<vmem>>, vector<8x32xf32>
    tpu.vector_store %arg24[%c0_91, %c0_92], %179 {strides = array<i32>} : memref<8x32xf32, #tpu.memory_space<vmem>>, vector<8x32xf32>,
    %c1_i32 = arith.constant 1 : i32
    %181 = arith.cmpi eq, %arg1, %c1_i32 : i32
    %182 = arith.extui %181 : i1 to i32
    %c0_i32_93 = arith.constant 0 : i32
    %183 = arith.cmpi ne, %182, %c0_i32_93 : i32
    scf.if %183 {
      %c0_94 = arith.constant 0 : index
      %c0_95 = arith.constant 0 : index
      %184 = vector.load %arg21[%c0_94, %c0_95] : memref<32x128xf32, #tpu.memory_space<vmem>>, vector<32x128xf32>
      %cst_96 = arith.constant dense<0.000000e+00> : vector<8x128xf32>
      %185 = tpu.matmul %179, %184, %cst_96 {dimension_numbers = #tpu.dot_dimension_numbers<[1], [0], [0], [1], [0, 0, 1, 1], [], []>} : vector<8x32xf32>, vector<32x128xf32>, vector<8x128xf32> -> vector<8x128xf32>
      %c0_97 = arith.constant 0 : index
      %c0_98 = arith.constant 0 : index
      %186 = vector.load %arg22[%c0_97, %c0_98] : memref<1x128xf32, #tpu.memory_space<vmem>>, vector<1x128xf32>
      %187 = vector.broadcast %186 : vector<1x128xf32> to vector<8x128xf32>
      %188 = arith.addf %185, %187 : vector<8x128xf32>
      %c0_99 = arith.constant 0 : index
      %c0_100 = arith.constant 0 : index
      %c0_101 = arith.constant 0 : index
      %189 = vector.load %arg23[%c0_99, %c0_100, %c0_101] : memref<1x8x128xf32, #tpu.memory_space<vmem>>, vector<1x8x128xf32>
      %190 = vector.shape_cast %189 : vector<1x8x128xf32> to vector<8x128xf32>
      %191 = vector.shape_cast %188 : vector<8x128xf32> to vector<1x8x128xf32>
      tpu.vector_store %arg23[%c0_99, %c0_100, %c0_101], %191 {strides = array<i32>} : memref<1x8x128xf32, #tpu.memory_space<vmem>>, vector<1x8x128xf32>,
    } else {
    }
    return
  }
  func.func @transform_0(%arg0: i32, %arg1: i32) -> (i32, i32, i32) {
    %c0_i32 = arith.constant 0 : i32
    %c0_i32_0 = arith.constant 0 : i32
    %c0_i32_1 = arith.constant 0 : i32
    return %arg0, %c0_i32, %c0_i32_0 : i32, i32, i32
  }
  func.func @transform_1(%arg0: i32, %arg1: i32) -> (i32, i32) {
    %c0_i32 = arith.constant 0 : i32
    %c0_i32_0 = arith.constant 0 : i32
    %c0_i32_1 = arith.constant 0 : i32
    return %c0_i32, %c0_i32_0 : i32, i32
  }
  func.func @transform_2(%arg0: i32, %arg1: i32) -> (i32, i32, i32) {
    %c0_i32 = arith.constant 0 : i32
    %c0_i32_0 = arith.constant 0 : i32
    %c0_i32_1 = arith.constant 0 : i32
    return %arg0, %c0_i32, %c0_i32_0 : i32, i32, i32
  }
  func.func @transform_3(%arg0: i32, %arg1: i32) -> (i32, i32, i32) {
    %c0_i32 = arith.constant 0 : i32
    %c0_i32_0 = arith.constant 0 : i32
    %c0_i32_1 = arith.constant 0 : i32
    return %arg1, %c0_i32, %c0_i32_0 : i32, i32, i32
  }
  func.func @transform_4(%arg0: i32, %arg1: i32) -> (i32, i32, i32) {
    %c0_i32 = arith.constant 0 : i32
    %c0_i32_0 = arith.constant 0 : i32
    %c0_i32_1 = arith.constant 0 : i32
    return %arg1, %c0_i32, %c0_i32_0 : i32, i32, i32
  }
  func.func @transform_5(%arg0: i32, %arg1: i32) -> (i32, i32, i32) {
    %c0_i32 = arith.constant 0 : i32
    %c0_i32_0 = arith.constant 0 : i32
    %c0_i32_1 = arith.constant 0 : i32
    return %arg1, %c0_i32, %c0_i32_0 : i32, i32, i32
  }
  func.func @transform_6(%arg0: i32, %arg1: i32) -> (i32, i32, i32) {
    %c0_i32 = arith.constant 0 : i32
    %c0_i32_0 = arith.constant 0 : i32
    %c0_i32_1 = arith.constant 0 : i32
    return %arg1, %c0_i32, %c0_i32_0 : i32, i32, i32
  }
  func.func @transform_7(%arg0: i32, %arg1: i32) -> (i32, i32, i32) {
    %c0_i32 = arith.constant 0 : i32
    %c0_i32_0 = arith.constant 0 : i32
    %c0_i32_1 = arith.constant 0 : i32
    return %arg1, %c0_i32, %c0_i32_0 : i32, i32, i32
  }
  func.func @transform_8(%arg0: i32, %arg1: i32) -> (i32, i32, i32) {
    %c0_i32 = arith.constant 0 : i32
    %c0_i32_0 = arith.constant 0 : i32
    %c0_i32_1 = arith.constant 0 : i32
    return %arg1, %c0_i32, %c0_i32_0 : i32, i32, i32
  }
  func.func @transform_9(%arg0: i32, %arg1: i32) -> (i32, i32, i32) {
    %c0_i32 = arith.constant 0 : i32
    %c0_i32_0 = arith.constant 0 : i32
    %c0_i32_1 = arith.constant 0 : i32
    return %arg1, %c0_i32, %c0_i32_0 : i32, i32, i32
  }
  func.func @transform_10(%arg0: i32, %arg1: i32) -> (i32, i32, i32) {
    %c0_i32 = arith.constant 0 : i32
    %c0_i32_0 = arith.constant 0 : i32
    %c0_i32_1 = arith.constant 0 : i32
    return %arg1, %c0_i32, %c0_i32_0 : i32, i32, i32
  }
  func.func @transform_11(%arg0: i32, %arg1: i32) -> (i32, i32, i32) {
    %c0_i32 = arith.constant 0 : i32
    %c0_i32_0 = arith.constant 0 : i32
    %c0_i32_1 = arith.constant 0 : i32
    return %arg1, %c0_i32, %c0_i32_0 : i32, i32, i32
  }
  func.func @transform_12(%arg0: i32, %arg1: i32) -> (i32, i32, i32) {
    %c0_i32 = arith.constant 0 : i32
    %c0_i32_0 = arith.constant 0 : i32
    %c0_i32_1 = arith.constant 0 : i32
    return %arg1, %c0_i32, %c0_i32_0 : i32, i32, i32
  }
  func.func @transform_13(%arg0: i32, %arg1: i32) -> (i32, i32, i32) {
    %c0_i32 = arith.constant 0 : i32
    %c0_i32_0 = arith.constant 0 : i32
    %c0_i32_1 = arith.constant 0 : i32
    return %arg1, %c0_i32, %c0_i32_0 : i32, i32, i32
  }
  func.func @transform_14(%arg0: i32, %arg1: i32) -> (i32, i32, i32) {
    %c0_i32 = arith.constant 0 : i32
    %c0_i32_0 = arith.constant 0 : i32
    %c0_i32_1 = arith.constant 0 : i32
    return %arg1, %c0_i32, %c0_i32_0 : i32, i32, i32
  }
  func.func @transform_15(%arg0: i32, %arg1: i32) -> (i32, i32, i32) {
    %c0_i32 = arith.constant 0 : i32
    %c0_i32_0 = arith.constant 0 : i32
    %c0_i32_1 = arith.constant 0 : i32
    return %arg1, %c0_i32, %c0_i32_0 : i32, i32, i32
  }
  func.func @transform_16(%arg0: i32, %arg1: i32) -> (i32, i32, i32) {
    %c0_i32 = arith.constant 0 : i32
    %c0_i32_0 = arith.constant 0 : i32
    %c0_i32_1 = arith.constant 0 : i32
    return %arg1, %c0_i32, %c0_i32_0 : i32, i32, i32
  }
  func.func @transform_17(%arg0: i32, %arg1: i32) -> (i32, i32, i32) {
    %c0_i32 = arith.constant 0 : i32
    %c0_i32_0 = arith.constant 0 : i32
    %c0_i32_1 = arith.constant 0 : i32
    return %arg1, %c0_i32, %c0_i32_0 : i32, i32, i32
  }
  func.func @transform_18(%arg0: i32, %arg1: i32) -> (i32, i32, i32) {
    %c0_i32 = arith.constant 0 : i32
    %c0_i32_0 = arith.constant 0 : i32
    %c0_i32_1 = arith.constant 0 : i32
    return %arg1, %c0_i32, %c0_i32_0 : i32, i32, i32
  }
  func.func @transform_19(%arg0: i32, %arg1: i32) -> (i32, i32) {
    %c0_i32 = arith.constant 0 : i32
    %c0_i32_0 = arith.constant 0 : i32
    %c0_i32_1 = arith.constant 0 : i32
    return %c0_i32, %c0_i32_0 : i32, i32
  }
  func.func @transform_20(%arg0: i32, %arg1: i32) -> (i32, i32) {
    %c0_i32 = arith.constant 0 : i32
    %c0_i32_0 = arith.constant 0 : i32
    %c0_i32_1 = arith.constant 0 : i32
    return %c0_i32, %c0_i32_0 : i32, i32
  }
  func.func @transform_21(%arg0: i32, %arg1: i32) -> (i32, i32, i32) {
    %c0_i32 = arith.constant 0 : i32
    %c0_i32_0 = arith.constant 0 : i32
    %c0_i32_1 = arith.constant 0 : i32
    return %arg0, %c0_i32, %c0_i32_0 : i32, i32, i32
  }
}

</mosaic_0001>

<bundles_post_ra>
// kernel: tpu_custom_call.1
= control target key start
LH: loop header
LB: loop body
LE: loop exit
PB: predicated region body
PF: predicated region fallthrough
CT: control target
= control target key end

     0   :  { %s4395_s0 = inlined_call_operand.hbm [shape: f32[2,8,32], index: 0, kind: input, shape index: {}]   ;;  %s4396_s1 = inlined_call_operand.hbm [shape: f32[8,8], index: 1, kind: input, shape index: {}]   ;;  %s4397_s2 = inlined_call_operand.vmem [shape: f32[2,1,8], index: 2, kind: input, shape index: {}]   ;;  %s4398_s3 = inlined_call_operand.vmem [shape: f32[2,32,32], index: 3, kind: input, shape index: {}]   ;;  %s4399_s4 = inlined_call_operand.hbm [shape: f32[2,1,32], index: 4, kind: input, shape index: {}]   ;;  %s4400_s5 = inlined_call_operand.vmem [shape: f32[2,32,32], index: 5, kind: input, shape index: {}]   ;;  %s4401_s6 = inlined_call_operand.hbm [shape: f32[2,1,32], index: 6, kind: input, shape index: {}]   ;;  %s4402_s7 = inlined_call_operand.vmem [shape: f32[2,32,32], index: 7, kind: input, shape index: {}]   ;;  %s4403_s8 = inlined_call_operand.hbm [shape: f32[2,1,32], index: 8, kind: input, shape index: {}]   ;;  %s4404_s9 = inlined_call_operand.hbm [shape: f32[2,32,32], index: 9, kind: input, shape index: {}]   ;;  %s4405_s10 = inlined_call_operand.vmem [shape: f32[2,1,32], index: 10, kind: input, shape index: {}]   ;;  %s4406_s11 = inlined_call_operand.vmem [shape: f32[2,1,32], index: 11, kind: input, shape index: {}]   ;;  %s4407_s12 = inlined_call_operand.vmem [shape: f32[2,1,32], index: 12, kind: input, shape index: {}]   ;;  %s4408_s13 = inlined_call_operand.hbm [shape: f32[2,32,64], index: 13, kind: input, shape index: {}]   ;;  %s4409_s14 = inlined_call_operand.vmem [shape: f32[2,1,64], index: 14, kind: input, shape index: {}]   ;;  %s4410_s15 = inlined_call_operand.vmem [shape: f32[2,64,32], index: 15, kind: input, shape index: {}]   ;;  %s4411_s16 = inlined_call_operand.vmem [shape: f32[2,1,32], index: 16, kind: input, shape index: {}]   ;;  %s4412_s17 = inlined_call_operand.vmem [shape: f32[2,1,32], index: 17, kind: input, shape index: {}]   ;;  %s4413_s18 = inlined_call_operand.vmem [shape: f32[2,1,32], index: 18, kind: input, shape index: {}]   ;;  %s4414_s19 = inlined_call_operand.vmem [shape: f32[32,128], index: 19, kind: input, shape index: {}]   ;;  %s4415_s20 = inlined_call_operand.vmem [shape: f32[1,128], index: 20, kind: input, shape index: {}]   ;;  %s4416_s21 = inlined_call_operand.hbm [shape: f32[2,8,128], index: 21, kind: output, shape index: {}]  }
   0x1   :  { %4452 = sst [smem:[#allocation33_spill]] %s4395_s0 }
   0x2   :  { %4453 = sst [smem:[#allocation34_spill]] %s4396_s1 }
   0x3   :  { %4454 = sst [smem:[#allocation35_spill]] %s4397_s2 }
   0x4   :  { %4455 = sst [smem:[#allocation36_spill]] %s4398_s3 }
   0x5   :  { %4456 = sst [smem:[#allocation37_spill]] %s4399_s4 }
   0x6   :  { %4457 = sst [smem:[#allocation38_spill]] %s4400_s5 }
   0x7   :  { %4458 = sst [smem:[#allocation39_spill]] %s4401_s6 }
   0x8   :  { %4459 = sst [smem:[#allocation40_spill]] %s4402_s7 }
   0x9   :  { %4460 = sst [smem:[#allocation41_spill]] %s4403_s8 }
   0xa   :  { %4461 = sst [smem:[#allocation42_spill]] %s4404_s9 }
   0xb   :  { %4462 = sst [smem:[#allocation43_spill]] %s4406_s11 }
   0xc   :  { %4463 = sst [smem:[#allocation44_spill]] %s4407_s12 }
   0xd   :  { %4464 = sst [smem:[#allocation45_spill]] %s4408_s13 }
   0xe   :  { %4465 = sst [smem:[#allocation46_spill]] %s4409_s14 }
   0xf   :  { %4466 = sst [smem:[#allocation47_spill]] %s4410_s15 }
  0x10   :  { %4467 = sst [smem:[#allocation48_spill]] %s4411_s16 }
  0x11   :  { %4468 = sst [smem:[#allocation49_spill]] %s4412_s17 }
  0x12   :  { %4469 = sst [smem:[#allocation50_spill]] %s4413_s18 }
  0x13   :  { %4470 = sst [smem:[#allocation51_spill]] %s4414_s19 }
  0x14   :  { %4471 = sst [smem:[#allocation52_spill]] %s4415_s20 }
  0x15   :  { %4472 = sst [smem:[#allocation53_spill]] %s4416_s21 }
  0x16   :  { %26 = vsyncpa [#allocation4], 0 }
  0x17   :  { %28 = vsyncpa [#allocation4 + $0x1], 0 }
  0x18   :  { %29 = vsyncpa [#allocation7], 0 }
  0x19   :  { %30 = vsyncpa [#allocation5], 0 }
  0x1a   :  { %32 = vsyncpa [#allocation5 + $0x1], 0  ;;  %s3672_s2 = smov 0   ;;  %s3674_s25 = smov 0  }
  0x1b   :  { %s3676_s26 = smov 0   ;;  %s3678_s27 = smov 0  }
  0x1c   :  { %s3680_s3 = smov 0   ;;  %s3682_s28 = smov 0  }
  0x1d   :  { %s3684_s29 = smov 0   ;;  %s3686_s0 = smov 0  }
  0x1e   :  { %s3688_s4 = smov 0   ;;  %s3690_s30 = smov 0  }
  0x1f   :  { %s3692_s5 = smov 0  }
  0x20 LB: > { %4473 = sst [smem:[#allocation18_spill]] %s3502_s25  ;;  %s47_s22 = sadd.s32 1, %s3530_s4  ;;  %s3538_s5 = sphi %s3692_s5, %s38_s5   ;;  %s3534_s30 = sphi %s3690_s30, %s4564_s30   ;;  %s3530_s4 = sphi %s3688_s4, %s4563_s4   ;;  %s3526_s0 = sphi %s3686_s0, %s4562_s0   ;;  %s3522_s29 = sphi %s3684_s29, %s4561_s29   ;;  %s3518_s28 = sphi %s3682_s28, %s4560_s28   ;;  %s3514_s3 = sphi %s3680_s3, %s4559_s3   ;;  %s3510_s27 = sphi %s3678_s27, %s4558_s27   ;;  %s3506_s26 = sphi %s3676_s26, %s4557_s26   ;;  %s3502_s25 = sphi %s3674_s25, %s4556_s25   ;;  %s3498_s2 = sphi %s3672_s2, %s4555_s2  }
  0x21   : > { %4474 = sst [smem:[#allocation19_spill]] %s3506_s26  ;;  %s50_s23 = sadd.s32 1, %s3534_s30 }
  0x22   : > { %4475 = sst [smem:[#allocation20_spill]] %s3510_s27  ;;  %p48_p0 = scmp.ge.s32.totalorder %s47_s22, 2 }
  0x23   : > { %4476 = sst [smem:[#allocation21_spill]] %s3514_s3  ;;  %s57_s1 = sadd.s32 1, %s3518_s28 }
  0x24   : > { %4477 = sst [smem:[#allocation22_spill]] %s3518_s28  ;;  %p4424_p1 = scmp.ne.s32.totalorder %s3518_s28, %s3514_s3 }
  0x25   : > { %4478 = sst [smem:[#allocation23_spill]] %s3526_s0  ;;  %p65_p2 = scmp.eq.s32.totalorder %s3538_s5, 0 }
  0x26   : > { %4479 = sst [smem:[#allocation24_spill]] %s3530_s4  ;;  %s4566_s22 = smov (%p48_p0, %s47_s22), 0 }
  0x27   : > { %4480 = sst [smem:[#allocation25_spill]] %s3534_s30  ;;  %s4568_s23 = smov (!%p48_p0, %s50_s23), %s3534_s30 }
  0x28   : > { %4481 = sst [smem:[#allocation26_spill]] %s3538_s5  ;;  %p3739_p3 = por %p65_p2, %p4424_p1 }
  0x29   : > { %4482 = sst [smem:[#allocation27_spill]] %s4566_s22  ;;  %s153_s21 = ssub.s32 %s3530_s4, %s4566_s22 }
  0x2a   : > { %p52_p4 = scmp.ge.s32.totalorder %s4568_s23, 2  ;;  %p154_p5 = scmp.eq.s32.totalorder %s153_s21, 0 }
  0x2b   : > { %s156_s20 = sadd.s32 1, %s3506_s26  ;;  %p163_p6 = scmp.ne.s32.totalorder %s3506_s26, %s3502_s25 }
  0x2c   : > { %s4570_s23 = smov (%p52_p4, %s4568_s23), 0  ;;  %p3074_p9 = scmp.lt.s32.totalorder %s3538_s5, 4 }
  0x2d   : > { %4484 = sst [smem:[#allocation28_spill]] %s4570_s23  ;;  %s54_s18 = ssub.s32 %s3534_s30, %s4570_s23 }
  0x2e   : > { %s3751_s19 = scalar_select %p154_p5, %s3506_s26, %s156_s20  }
  0x2f   : > { %p3755_p7 = por %p163_p6, %p65_p2  ;;  %p55_p8 = scmp.eq.s32.totalorder %s54_s18, 0 }
  0x30   : > { %4485 = sst [smem:[#allocation29_spill]] %s3751_s19  ;;  %s642_s22 = sand.u32 1, %s3538_s5  }
  0x31   : > { %s3762_s15 = scalar_select %p55_p8, %s3518_s28, %s57_s1  }
  0x32   : > { %s644_s21 = sand.u32 1, %s3518_s28   ;;  %s2733_s14 = sshll.u32 %s3534_s30, 7 }
  0x33   : > { %4487 = sst [smem:[#allocation30_spill]] %s3762_s15  ;;  %s2732_s16 = sshll.u32 %s644_s21, 3 }
  0x34   : > { %s4488_s7 = sld [smem:[#allocation33_spill]]  ;;  %s646_s23 = scalar_lea.vmem [#allocation3], %s2732_s16 }
  0x35   : > { %s653_s19 = sshll.u32 %s646_s23, 4  ;;  %p3773_p10 = pnand %p3074_p9, %p3739_p3  ;;  %s3777_s19 = int_to_ptr.vmem [resolvable:$true] %s653_s19 }
  0x36   : > { %p3781_p11 = pnand %p3074_p9, %p3755_p7  ;;  %s3786_s12 = sand.u32 1, %s3506_s26  }
  0x37   : > { %p3202_p13 = pneg %p3773_p10 }
  0x38   : > { %s4490_s11 = scalar_select %p3781_p11, 1, 0 }
  0x3a   : > { %s3769_s20 = scalar_lea.hbm %s4488_s7, %s2733_s14  ;;  %s3788_s14 = scalar_lea.sflag [#allocation4], %s642_s22 }
  0x3b   : > { %s3200_s16 = scalar_lea.hbm %s3769_s20, 128  ;;  %s3205_s17 = scalar_lea.hbm %s4488_s7, 256 }
  0x3c   : > { %p3201_p12 = scmp.ne.s32.totalorder %s3769_s20, %s3200_s16  ;;  %p3206_p3 = scmp.lt.u32.totalorder %s3769_s20, %s4488_s7 }
  0x3d   : > { %p3207_p4 = scmp.lt.u32.totalorder %s3205_s17, %s3200_s16  ;;  %p3209_p6 = scmp.lt.u32.totalorder %s3200_s16, %s3769_s20 }
  0x3e   : > { %p3203_p0 = pnand %p3202_p13, %p3201_p12 }
  0x3f   : > { %p3208_p5 = por %p3207_p4, %p3206_p3 }
  0x40   : > { %p3204_p2 = pneg %p3203_p0 }
  0x41   : > { %p3210_p7 = por %p3209_p6, %p3208_p5 }
  0x43   : > { %p3211_p8 = pnand %p3210_p7, %p3204_p2 }
  0x45   : > { %3214 = shalt.err (!%p3211_p8)
}
  0x46   : > { %s3215_s22 = scalar_lea.vmem %s3777_s19, 128  ;;  %s3540_s23 = smov [#allocation3]  }
  0x47   : > { %p3216_p9 = scmp.ne.s32.totalorder %s3777_s19, %s3215_s22  ;;  %s3220_s1 = sshll.u32 %s3540_s23, 4  ;;  %s3221_s1 = int_to_ptr.vmem [resolvable:$false] %s3220_s1 }
  0x48   : > { %s3222_s24 = scalar_lea.vmem %s3221_s1, 256  ;;  %p3223_p1 = scmp.lt.s32.totalorder %s3777_s19, %s3221_s1 }
  0x49   : > { %p3218_p12 = pnand %p3216_p9, %p3202_p13  ;;  %p3224_p3 = scmp.lt.s32.totalorder %s3222_s24, %s3215_s22 }
  0x4b   : > { %p3219_p0 = pneg %p3218_p12  ;;  %p3225_p4 = por %p3224_p3, %p3223_p1 }
  0x4d   : > { %p3226_p5 = pnand %p3225_p4, %p3219_p0 }
  0x4f   : > { %3229 = shalt.err (!%p3226_p5)
}
  0x50   : > { %3053 = dma.hbm_to_vmem [thread:$0]  (!%p3773_p10), %s3769_s20, 128, %s3777_s19, %s3788_s14  }
  0x51   : > { %s3817_s16 = sshll.u32 %s3530_s4, 4  ;;  %s677_s17 = scalar_lea.vmem [#allocation8], %s3786_s12 }
  0x52   : > { %s684_s21 = sshll.u32 %s677_s17, 4  ;;  %s4491_s22 = sld [smem:[#allocation37_spill]]  ;;  %s685_s21 = int_to_ptr.vmem [resolvable:$true] %s684_s21 }
  0x53   : > { %p3830_p13 = pneg %p3781_p11 }
  0x58   : > { %s3824_s24 = scalar_lea.hbm %s4491_s22, %s3817_s16  ;;  %s3235_s23 = scalar_lea.hbm %s4491_s22, 32 }
  0x59   : > { %s3230_s18 = scalar_lea.hbm %s3824_s24, 16  ;;  %p3236_p6 = scmp.lt.u32.totalorder %s3824_s24, %s4491_s22 }
  0x5a   : > { %p3231_p1 = scmp.ne.s32.totalorder %s3824_s24, %s3230_s18  ;;  %p3237_p7 = scmp.lt.u32.totalorder %s3235_s23, %s3230_s18 }
  0x5b   : > { %p3239_p9 = scmp.lt.u32.totalorder %s3230_s18, %s3824_s24 }
  0x5c   : > { %p3233_p10 = pnand %p3830_p13, %p3231_p1  ;;  %p3238_p8 = por %p3237_p7, %p3236_p6 }
  0x5e   : > { %p3234_p2 = pneg %p3233_p10  ;;  %p3240_p12 = por %p3239_p9, %p3238_p8 }
  0x60   : > { %p3241_p0 = pnand %p3240_p12, %p3234_p2 }
  0x62   : > { %3244 = shalt.err (!%p3241_p0)
}
  0x63   : > { %s3245_s30 = scalar_lea.vmem %s685_s21, 16  ;;  %s3541_s15 = smov [#allocation8]  }
  0x64   : > { %p3246_p3 = scmp.ne.s32.totalorder %s685_s21, %s3245_s30  ;;  %s3250_s26 = sshll.u32 %s3541_s15, 4  ;;  %s3251_s26 = int_to_ptr.vmem [resolvable:$false] %s3250_s26 }
  0x65   : > { %s3252_s20 = scalar_lea.vmem %s3251_s26, 32  ;;  %p3253_p1 = scmp.lt.s32.totalorder %s685_s21, %s3251_s26 }
  0x66   : > { %p3248_p4 = pnand %p3246_p3, %p3830_p13  ;;  %p3254_p10 = scmp.lt.s32.totalorder %s3252_s20, %s3245_s30 }
  0x68   : > { %p3249_p5 = pneg %p3248_p4  ;;  %p3255_p11 = por %p3254_p10, %p3253_p1 }
  0x6a   : > { %p3256_p6 = pnand %p3255_p11, %p3249_p5 }
  0x6c   : > { %3259 = shalt.err (!%p3256_p6)
}
  0x6d   : > { %p4493_p7 = scmp.ne.s32.totalorder %s4490_s11, 0  ;;  %s4494_s6 = sld [smem:[#allocation39_spill]] }
  0x6e   : > { %s702_s26 = scalar_lea.vmem [#allocation9], %s3786_s12  ;;  %s4495_s8 = sld [smem:[#allocation41_spill]] }
  0x6f   : > { %3056 = dma.hbm_to_vmem [thread:$0]  (!%p4493_p7), %s3824_s24, 16, %s685_s21, %s3788_s14  }
  0x70   : > { %s709_s30 = sshll.u32 %s702_s26, 4  ;;  %s710_s30 = int_to_ptr.vmem [resolvable:$true] %s709_s30 }
  0x73   : > { %s3854_s15 = scalar_lea.hbm %s4494_s6, %s3817_s16  ;;  %s3265_s7 = scalar_lea.hbm %s4494_s6, 32 }
  0x74   : > { %s3861_s1 = scalar_lea.hbm %s4495_s8, %s3817_s16  ;;  %s3260_s20 = scalar_lea.hbm %s3854_s15, 16 }
  0x75   : > { %p3261_p11 = scmp.ne.s32.totalorder %s3854_s15, %s3260_s20  ;;  %p3266_p9 = scmp.lt.u32.totalorder %s3854_s15, %s4494_s6 }
  0x76   : > { %p3267_p12 = scmp.lt.u32.totalorder %s3265_s7, %s3260_s20  ;;  %p3269_p3 = scmp.lt.u32.totalorder %s3260_s20, %s3854_s15 }
  0x77   : > { %p3263_p2 = pnand %p3261_p11, %p3830_p13 }
  0x78   : > { %p3268_p0 = por %p3267_p12, %p3266_p9 }
  0x79   : > { %p3264_p8 = pneg %p3263_p2 }
  0x7a   : > { %p3270_p4 = por %p3269_p3, %p3268_p0 }
  0x7c   : > { %p3271_p5 = pnand %p3270_p4, %p3264_p8 }
  0x7e   : > { %3274 = shalt.err (!%p3271_p5)
}
  0x7f   : > { %s3275_s16 = scalar_lea.vmem %s710_s30, 16  ;;  %s3542_s26 = smov [#allocation9]  }
  0x80   : > { %p3276_p1 = scmp.ne.s32.totalorder %s710_s30, %s3275_s16  ;;  %s3280_s17 = sshll.u32 %s3542_s26, 4  ;;  %s3281_s17 = int_to_ptr.vmem [resolvable:$false] %s3280_s17 }
  0x81   : > { %s3282_s23 = scalar_lea.vmem %s3281_s17, 32  ;;  %p3283_p11 = scmp.lt.s32.totalorder %s710_s30, %s3281_s17 }
  0x82   : > { %p3278_p10 = pnand %p3276_p1, %p3830_p13  ;;  %p3284_p2 = scmp.lt.s32.totalorder %s3282_s23, %s3275_s16 }
  0x84   : > { %p3279_p6 = pneg %p3278_p10  ;;  %p3285_p7 = por %p3284_p2, %p3283_p11 }
  0x86   : > { %p3286_p9 = pnand %p3285_p7, %p3279_p6 }
  0x88   : > { %3289 = shalt.err (!%p3286_p9)
}
  0x89   : > { %p4496_p12 = scmp.ne.s32.totalorder %s4490_s11, 0  ;;  %s727_s22 = scalar_lea.vmem [#allocation10], %s3786_s12 }
  0x8a   : > { %s734_s20 = sshll.u32 %s727_s22, 4  ;;  %s2737_s21 = sshll.u32 %s3786_s12, 5  ;;  %s735_s20 = int_to_ptr.vmem [resolvable:$true] %s734_s20 }
  0x8b   : > { %3059 = dma.hbm_to_vmem [thread:$0]  (!%p4496_p12), %s3854_s15, 16, %s710_s30, %s3788_s14  }
  0x8c   : > { %s3290_s24 = scalar_lea.hbm %s3861_s1, 16  ;;  %s3295_s16 = scalar_lea.hbm %s4495_s8, 32 }
  0x8d   : > { %p3291_p8 = scmp.ne.s32.totalorder %s3861_s1, %s3290_s24  ;;  %p3296_p3 = scmp.lt.u32.totalorder %s3861_s1, %s4495_s8 }
  0x8e   : > { %p3297_p4 = scmp.lt.u32.totalorder %s3295_s16, %s3290_s24  ;;  %p3299_p1 = scmp.lt.u32.totalorder %s3290_s24, %s3861_s1 }
  0x8f   : > { %p3293_p7 = pnand %p3291_p8, %p3830_p13 }
  0x90   : > { %p3298_p5 = por %p3297_p4, %p3296_p3 }
  0x91   : > { %p3294_p0 = pneg %p3293_p7 }
  0x92   : > { %p3300_p10 = por %p3299_p1, %p3298_p5 }
  0x94   : > { %p3301_p6 = pnand %p3300_p10, %p3294_p0 }
  0x96   : > { %3304 = shalt.err (!%p3301_p6)
}
  0x97   : > { %s3305_s15 = scalar_lea.vmem %s735_s20, 16  ;;  %s3543_s30 = smov [#allocation10]  }
  0x98   : > { %p3306_p11 = scmp.ne.s32.totalorder %s735_s20, %s3305_s15  ;;  %s3310_s23 = sshll.u32 %s3543_s30, 4  ;;  %s3311_s23 = int_to_ptr.vmem [resolvable:$false] %s3310_s23 }
  0x99   : > { %s3312_s22 = scalar_lea.vmem %s3311_s23, 32  ;;  %p3313_p8 = scmp.lt.s32.totalorder %s735_s20, %s3311_s23 }
  0x9a   : > { %p3308_p2 = pnand %p3306_p11, %p3830_p13  ;;  %p3314_p7 = scmp.lt.s32.totalorder %s3312_s22, %s3305_s15 }
  0x9c   : > { %p3309_p9 = pneg %p3308_p2  ;;  %p3315_p12 = por %p3314_p7, %p3313_p8 }
  0x9e   : > { %p3316_p3 = pnand %p3315_p12, %p3309_p9 }
  0xa0   : > { %3319 = shalt.err (!%p3316_p3)
}
  0xa1   : > { %p4497_p4 = scmp.ne.s32.totalorder %s4490_s11, 0  ;;  %s2794_s24 = sshll.u32 %s3530_s4, 9 }
  0xa2   : > { %s745_s7 = scalar_lea.vmem [#allocation11], %s2737_s21  ;;  %s4498_s9 = sld [smem:[#allocation42_spill]] }
  0xa3   : > { %3062 = dma.hbm_to_vmem [thread:$0]  (!%p4497_p4), %s3861_s1, 16, %s735_s20, %s3788_s14  }
  0xa4   : > { %s752_s18 = sshll.u32 %s745_s7, 4  ;;  %s3911_s18 = int_to_ptr.vmem [resolvable:$true] %s752_s18 }
  0xa8   : > { %s3909_s17 = scalar_lea.hbm %s4498_s9, %s2794_s24  ;;  %s3325_s30 = scalar_lea.hbm %s4498_s9, 1024 }
  0xa9   : > { %s3320_s15 = scalar_lea.hbm %s3909_s17, 512  ;;  %p3326_p1 = scmp.lt.u32.totalorder %s3909_s17, %s4498_s9 }
  0xaa   : > { %p3321_p12 = scmp.ne.s32.totalorder %s3909_s17, %s3320_s15  ;;  %p3327_p10 = scmp.lt.u32.totalorder %s3325_s30, %s3320_s15 }
  0xab   : > { %p3329_p11 = scmp.lt.u32.totalorder %s3320_s15, %s3909_s17 }
  0xac   : > { %p3323_p0 = pnand %p3321_p12, %p3830_p13  ;;  %p3328_p6 = por %p3327_p10, %p3326_p1 }
  0xae   : > { %p3324_p5 = pneg %p3323_p0  ;;  %p3330_p2 = por %p3329_p11, %p3328_p6 }
  0xb0   : > { %p3331_p9 = pnand %p3330_p2, %p3324_p5 }
  0xb2   : > { %3334 = shalt.err (!%p3331_p9)
}
  0xb3   : > { %s3335_s7 = scalar_lea.vmem %s3911_s18, 512  ;;  %s3544_s16 = smov [#allocation11]  }
  0xb4   : > { %p3336_p8 = scmp.ne.s32.totalorder %s3911_s18, %s3335_s7  ;;  %s3340_s26 = sshll.u32 %s3544_s16, 4  ;;  %s3341_s26 = int_to_ptr.vmem [resolvable:$false] %s3340_s26 }
  0xb5   : > { %s3342_s1 = scalar_lea.vmem %s3341_s26, 1024  ;;  %p3343_p12 = scmp.lt.s32.totalorder %s3911_s18, %s3341_s26 }
  0xb6   : > { %p3338_p7 = pnand %p3336_p8, %p3830_p13  ;;  %p3344_p0 = scmp.lt.s32.totalorder %s3342_s1, %s3335_s7 }
  0xb8   : > { %p3339_p3 = pneg %p3338_p7  ;;  %p3345_p1 = por %p3344_p0, %p3343_p12 }
  0xba   : > { %p3346_p10 = pnand %p3345_p1, %p3339_p3 }
  0xbc   : > { %3349 = shalt.err (!%p3346_p10)
}
  0xbd   : > { %s4432_s15 = smov 128   ;;  %s4433_s20 = smov 8  }
  0xbe   : > { %3065 = dma.hbm_to_vmem [thread:$0]  (!%p4497_p4), %s3909_s17, 512, %s3911_s18, %s3788_s14, %s4432_s15, %s4432_s15, %s4433_s20  }
  0xbf   : > { %s3939_s30 = sadd.s32 4294967295, %s3538_s5   ;;  %s2728_s23 = sadd.s32 4294967294, %s3538_s5  }
  0xc0   : > { %p70_p5 = scmp.ne.s32.totalorder %s3514_s3, %s3510_s27  ;;  %p4435_p6 = scmp.eq.s32.totalorder %s3939_s30, 0 }
  0xc1   : > { %p169_p11 = scmp.ne.s32.totalorder %s3502_s25, %s3498_s2  ;;  %p599_p2 = scmp.eq.s32.totalorder %s3939_s30, 3 }
  0xc2   : > { %p3950_p9 = por %p4435_p6, %p70_p5  ;;  %p605_p8 = scmp.eq.s32.totalorder %s2728_s23, 3 }
  0xc3   : > { %p3956_p7 = por %p169_p11, %p4435_p6  ;;  %p4501_p3 = scmp.ne.s32.totalorder %s3518_s28, %s3514_s3 }
  0xc4   : > { %s4499_s22 = scalar_select %p3950_p9, 1, 0 }
  0xc5   : > { %s4500_s18 = scalar_select %p3956_p7, 1, 0 }
  0xc6   : > { %p3963_p12 = por %p599_p2, %p4501_p3  ;;  %p3967_p0 = por %p605_p8, %p70_p5 }
  0xc7   : > { %p2729_p1 = scmp.ge.s32.totalorder %s3538_s5, 1  ;;  %p612_p10 = scmp.lt.s32.totalorder %s3538_s5, 5 }
  0xc8   : > { %s4502_s17 = scalar_select %p3963_p12, 1, 0 }
  0xc9   : > { %s4504_s2 = scalar_select %p3967_p0, 1, 0 }
  0xca   : > { %4503 = sst [smem:[#allocation31_spill]] %s4502_s17  ;;  %p3973_p9 = pnand %p2729_p1, %p612_p10 }
  0xcb   : > { %4505 = sst [smem:[#allocation32_spill]] %s4504_s2  ;;  %s3547_s16 = smov [#allocation6]  }
  0xcc   : > { %s4506_s7 = scalar_select %p3973_p9, 1, 0 }
  0xcd   : > { %s625_s26 = sshll.u32 %s3547_s16, 4  ;;  %s4507_s13 = sld [smem:[#allocation45_spill]]  ;;  %s3990_s26 = int_to_ptr.vmem [resolvable:$true] %s625_s26 }
  0xce   : > { %p3046_p5 = pneg %p3973_p9  ;;  %s784_s20 = scalar_lea.vmem [#allocation12], %s2737_s21 }
  0xcf   : > { %s791_s6 = sshll.u32 %s784_s20, 4  ;;  %s3988_s6 = int_to_ptr.vmem [resolvable:$true] %s791_s6 }
  0xd0   : > { %p3994_p11 = pnand %p3046_p5, %p4435_p6 }
  0xd2   : > { %s4508_s16 = scalar_select %p3994_p11, 1, 0 }
  0xd3   : > { %s3982_s15 = scalar_lea.hbm %s4507_s13, %s2794_s24  ;;  %s3355_s12 = scalar_lea.hbm %s4507_s13, 1024 }
  0xd4   : > { %s3350_s24 = scalar_lea.hbm %s3982_s15, 512  ;;  %p3356_p1 = scmp.lt.u32.totalorder %s3982_s15, %s4507_s13 }
  0xd5   : > { %p3351_p2 = scmp.ne.s32.totalorder %s3982_s15, %s3350_s24  ;;  %p3357_p10 = scmp.lt.u32.totalorder %s3355_s12, %s3350_s24 }
  0xd6   : > { %p3359_p12 = scmp.lt.u32.totalorder %s3350_s24, %s3982_s15 }
  0xd7   : > { %p3353_p8 = pnand %p3351_p2, %p3830_p13  ;;  %p3358_p0 = por %p3357_p10, %p3356_p1 }
  0xd9   : > { %p3354_p3 = pneg %p3353_p8  ;;  %p3360_p5 = por %p3359_p12, %p3358_p0 }
  0xdb   : > { %p3361_p6 = pnand %p3360_p5, %p3354_p3 }
  0xdd   : > { %3364 = shalt.err (!%p3361_p6)
}
  0xde   : > { %s3365_s8 = scalar_lea.vmem %s3988_s6, 512  ;;  %s3548_s1 = smov [#allocation12]  }
  0xdf   : > { %p3366_p2 = scmp.ne.s32.totalorder %s3988_s6, %s3365_s8  ;;  %s3370_s23 = sshll.u32 %s3548_s1, 4  ;;  %s3371_s23 = int_to_ptr.vmem [resolvable:$false] %s3370_s23 }
  0xe0   : > { %s3372_s21 = scalar_lea.vmem %s3371_s23, 1024  ;;  %p3373_p9 = scmp.lt.s32.totalorder %s3988_s6, %s3371_s23 }
  0xe1   : > { %p3368_p8 = pnand %p3366_p2, %p3830_p13  ;;  %p3374_p11 = scmp.lt.s32.totalorder %s3372_s21, %s3365_s8 }
  0xe3   : > { %p3369_p7 = pneg %p3368_p8  ;;  %p3375_p1 = por %p3374_p11, %p3373_p9 }
  0xe5   : > { %p3376_p10 = pnand %p3375_p1, %p3369_p7 }
  0xe7   : > { %3379 = shalt.err (!%p3376_p10)
}
  0xe8   : > { %s4509_s24 = smov 8   ;;  %s4510_s12 = smov 128  }
  0xe9   : > { %3068 = dma.hbm_to_vmem [thread:$0]  (!%p4497_p4), %s3982_s15, 512, %s3988_s6, %s3788_s14, %s4510_s12, %s4510_s12, %s4509_s24  }
  0xea   : > { %s4511_s1 = sld [smem:[#allocation34_spill]]  ;;  %p4512_p6 = scmp.ne.s32.totalorder %s4508_s16, 0 }
  0xec   : > { %p3382_p9 = pneg %p4512_p6 }
  0xf0   : > { %s3380_s9 = scalar_lea.hbm %s4511_s1, 128 }
  0xf1   : > { %p3381_p13 = scmp.ne.s32.totalorder %s4511_s1, %s3380_s9  ;;  %p3387_p0 = scmp.lt.u32.totalorder %s3380_s9, %s4511_s1 }
  0xf3   : > { %p3383_p7 = pnand %p3382_p9, %p3381_p13 }
  0xf5   : > { %p3384_p12 = pneg %p3383_p7 }
  0xf7   : > { %p3389_p11 = pnand %p3387_p0, %p3384_p12 }
  0xf9   : > { %3392 = shalt.err (!%p3389_p11)
}
  0xfa   : > { %s3393_s6 = scalar_lea.vmem %s3990_s26, 128  ;;  %p3401_p2 = scmp.lt.s32.totalorder %s3990_s26, %s3990_s26 }
  0xfb   : > { %p3394_p4 = scmp.ne.s32.totalorder %s3990_s26, %s3393_s6  ;;  %p3402_p8 = scmp.lt.s32.totalorder %s3393_s6, %s3393_s6 }
  0xfd   : > { %p3396_p3 = pnand %p3394_p4, %p3382_p9  ;;  %p3403_p1 = por %p3402_p8, %p3401_p2 }
  0xff   : > { %p3397_p5 = pneg %p3396_p3 }
 0x101   : > { %p3404_p10 = pnand %p3403_p1, %p3397_p5 }
 0x103   : > { %3407 = shalt.err (!%p3404_p10)
}
 0x104   : > { %3049 = dma.hbm_to_vmem [thread:$0]  (!%p4512_p6), %s4511_s1, 128, %s3990_s26, [#allocation7]  }
 0x105   : > { %p4513_p13 = scmp.ne.s32.totalorder %s4506_s7, 0 }
 0x106   : > { %s837_s14 = sand.u32 (!%p4513_p13), 1, %s3939_s30   ;;  %s4439_s15 = sand.u32 (!%p4513_p13), 1, %s3514_s3  }
 0x107   : > { %835 = sbr.rel (%p4513_p13) target bundleno = 3034 (0xbda), region = 104  ;;  %s4050_s21 = sshll.u32 (!%p4513_p13), %s4439_s15, 3 }
 0x108   : > { %s838_s24 = scalar_lea.sflag (!%p4513_p13), [#allocation4], %s837_s14  ;;  %p4514_p9 = scmp.ne.s32.totalorder (!%p4513_p13), %s4499_s22, 0 }
 0x10e   : > { %3481 = dma.done.wait (%p4514_p9), %s838_s24, 128  }
 0x10f   : > { %3483 = vsyncadd (%p4514_p9), %s838_s24, 4294967168  ;;  %p4515_p6 = scmp.eq.s32.totalorder %s3939_s30, 0 }
 0x111   : > { %3485 = dma.done.wait (%p4515_p6), [#allocation7], 128   ;;  %p4516_p7 = pmov %p4515_p6 }
 0x112   : > { %s4062_s7 = sand.u32 1, %s3502_s25   ;;  %p4517_p12 = scmp.ne.s32.totalorder %s4500_s18, 0 }
 0x113   : > { %3487 = vsyncadd (%p4516_p7), [#allocation7], 4294967168 }
 0x114   : > { %3489 = dma.done.wait (%p4517_p12), %s838_s24, 1072  }
 0x115   : > { %3491 = vsyncadd (%p4517_p12), %s838_s24, 4294966224  ;;  %s2746_s22 = sshll.u32 %s4062_s7, 5  ;;  %p1012_p0 = scmp.lt.s32.totalorder %s3526_s0, 1 }
 0x116   : > { %p1015_p11 = scmp.lt.s32.totalorder %s3522_s29, 1  ;;  %s4519_s24 = sld [smem:[#allocation36_spill]] }
 0x117   : > { %s4073_s30 = scalar_select %p1012_p0, %s3526_s0, 1 }
 0x118   : > { %s4076_s12 = scalar_select %p1015_p11, %s3522_s29, 1 }
 0x119   : > { %s4520_s26 = sld [smem:[#allocation38_spill]]  ;;  %s4521_s28 = sld [smem:[#allocation40_spill]] }
 0x11a   : > { %s2796_s8 = sshll.u32 %s4076_s12, 5  ;;  %s2799_s15 = sshll.u32 %s4076_s12, 6 }
 0x11b   : > { %s4525_s3 = sld [smem:[#allocation48_spill]]  ;;  %s4526_s1 = sld [smem:[#allocation47_spill]] }
 0x11c   : > { %s1019_s19 = scalar_lea.vmem %s4519_s24, %s2796_s8  ;;  %s4527_s23 = sld [smem:[#allocation49_spill]] }
 0x11d   : > { %s4528_s6 = sld [smem:[#allocation50_spill]]  ;;  %s861_s14 = scalar_lea.vmem [#allocation9], %s4062_s7 }
 0x11e   : > { %s869_s5 = scalar_lea.vmem [#allocation10], %s4062_s7  ;;  %s4132_s24 = scalar_lea.vmem [#allocation11], %s2746_s22 }
 0x11f   : > { %s4093_s16 = scalar_lea.vmem %s4520_s26, %s2796_s8  ;;  %s4098_s25 = scalar_lea.vmem %s4521_s28, %s2796_s8 }
 0x120   : > { %s4134_s17 = scalar_lea.vmem [#allocation12], %s2746_s22  ;;  %p2757_p4 = scmp.ne.s32.totalorder %s3522_s29, 0 }
 0x121   : > { %s1049_s0 = scalar_lea.vmem %s4525_s3, %s4076_s12  ;;  %s4120_s8 = scalar_lea.vmem %s4526_s1, %s2799_s15  ;;  %vm1061_vm0 = vcmask (!%p2757_p4), 261120  }
 0x122   : > { %s1052_s11 = scalar_lea.vmem %s4527_s23, %s4076_s12  ;;  %s1011_s3 = scalar_lea.vmem [#allocation13], %s4050_s21 }
 0x123   : > { %s1055_s9 = scalar_lea.vmem %s4528_s6, %s4076_s12  ;;  %1059 = sbr.rel (%p2757_p4) target bundleno = 298 (0x12a), region = 136 }
 0x124   : > { %s4529_s15 = scalar_lea.vmem (!%p2757_p4), [#allocation3], %s4050_s21 }
 0x125   : > { %v1060_v0 = vld [vmem:[%s4529_s15] sm:$0xff] (!%p2757_p4) }
 0x126   : > { %1062 = vst.msk [vmem:[#allocation2] sm:$0xff] (!%p2757_p4), %vm1061_vm0, %v1060_v0 }
 0x12a PF: > { %v1073_v1 = vld [vmem:[%s1019_s19] sm:$0xff]  ;;  %v1074_v2 = vld [vmem:[%s1019_s19 + $0x8] sm:$0xff]  ;;  %v1075_v3 = vld [vmem:[%s1019_s19 + $0x10] sm:$0xff]  ;;  %v3549_v4 = vmov 0.0|0.0   ;;  %vm3550_vm1 = vmmov 0   ;;  %v3551_v7 = vmov 0.0   ;;  %s4533_s23 = scalar_lea.vmem %s4405_s10, %s4076_s12 }
 0x12b   : > { %2980 = vmatprep.subr.bf16.mxu1 %v3549_v4  ;;  %v2981_v5 = vpack.c.bf16 %v1074_v2, %v1073_v1  ;;  %v1076_v6 = vld [vmem:[%s1019_s19 + $0x18] sm:$0xff]  ;;  %2863 = vmatprep.mubr.msk.f32.mxu1 %vm3550_vm1, %v3551_v7  ;;  %v1158_v9 = vld [vmem:[%s4093_s16] sm:$0xff]  ;;  %v1159_v10 = vld [vmem:[%s4093_s16 + $0x8] sm:$0xff]  ;;  %vm1084_vm2 = vcmask 261120   ;;  %vm1320_vm3 = vcmask 64512   ;;  %s3553_s22 = smov 120  }
 0x12c   : > { %2992 = vmatprep.subr.bf16.mxu0 %v3549_v4  ;;  %2885 = vmatprep.mubr.msk.f32.mxu0 %vm3550_vm1, %v3551_v7  ;;  %v2984_v8 = vpack.c.bf16 %v1076_v6, %v1075_v3  ;;  %v2987_v12 = vpack.c.bf16 %v1159_v10, %v1158_v9  ;;  %v1160_v13 = vld [vmem:[%s4093_s16 + $0x10] sm:$0xff]  ;;  %v1161_v14 = vld [vmem:[%s4093_s16 + $0x18] sm:$0xff]  ;;  %v1239_v16 = vld [vmem:[%s4098_s25] sm:$0xff]  ;;  %s3552_s16 = smov 112   ;;  %s3554_s19 = smov 104   ;;  %vm1998_vm4 = vcmask 130048  }
 0x12d   : > { %2982 = vmatpush3.bf16.msra.mxu1 %v2981_v5  ;;  %v4149_v11 = vld [vmem:[#allocation2] sm:$0xff]  ;;  %v2990_v15 = vpack.c.bf16 %v1161_v14, %v1160_v13  ;;  %v1240_v17 = vld [vmem:[%s4098_s25 + $0x8] sm:$0xff]  ;;  %v1241_v18 = vld [vmem:[%s4098_s25 + $0x10] sm:$0xff]  ;;  %s4531_s20 = sld [smem:[#allocation35_spill]]  ;;  %s3556_s28 = smov 16   ;;  %vm2000_vm5 = vcmask 195584  }
 0x12e   : > { %2983 = vmatprep.subr.bf16.mxu1 %v3549_v4  ;;  %v2993_v19 = vpack.c.bf16 %v1240_v17, %v1239_v16  ;;  %v1242_v20 = vld [vmem:[%s4098_s25 + $0x18] sm:$0xff]  ;;  %v2761_v24 = vld [vmem:[%s861_s14] ss:$0 sm:$0xff]  ;;  %s4530_s25 = scalar_lea.vmem [#allocation8], %s4062_s7  ;;  %s3557_s1 = smov 24   ;;  %vm2217_vm6 = vcmask 523264  }
 0x12f   : > { %v2996_v21 = vpack.c.bf16 %v1242_v20, %v1241_v18  ;;  %v2759_v28 = vld [vmem:[%s4530_s25] ss:$0 sm:$0xff]  ;;  %v1064_v40 = vld [vmem:[#allocation6] sm:$0xff]  ;;  %s4534_s27 = sld [smem:[#allocation43_spill]]  ;;  %p2787_p3 = scmp.ne.s32.totalorder %s3522_s29, 1 }
 0x130   : > { %2994 = vmatpush3.bf16.msra.mxu0 %v2993_v19  ;;  %v2763_v30 = vld [vmem:[%s869_s5] ss:$0 sm:$0xff]  ;;  %vm3559_vm7 = vmmov (!%p2787_p3), 0   ;;  %s4544_s14 = sld [smem:[#allocation52_spill]] (!%p2787_p3) }
 0x131   : > { %2985 = vmatpush3.bf16.msra.mxu1 %v2984_v8  ;;  %2995 = vmatprep.subr.bf16.mxu0 %v3549_v4 }
 0x132   : > { %2986 = vmatprep.subr.bf16.mxu1 %v3549_v4 }
 0x133   : > { %s4532_s4 = scalar_lea.vmem %s4531_s20, %s4073_s30  ;;  %s3555_s30 = smov 8  }
 0x134   : > { %2864 = vmatmul.mubr.msk.f32.vlgmr.msra.gmra.mrb[0].mxu1 %vm1084_vm2, %v4149_v11  ;;  %2997 = vmatpush3.bf16.msra.mxu0 %v2996_v21  ;;  %v2758_v41 = vld [vmem:[%s4532_s4] ss:$0 sm:$0xff] }
 0x135   : > { %2988 = vmatpush3.bf16.msra.mxu1 %v2987_v12  ;;  %2874 = vmatprep.mubr.msk.f32.mxu1 %vm3550_vm1, %v3551_v7  ;;  %v1072_v42 = vadd.f32 %v2758_v41, %v1064_v40  ;;  %v2003_v40 = vld [vmem:[%s4132_s24 + $0x8] sm:$0xff]  ;;  %s4535_s6 = scalar_lea.vmem %s4534_s27, %s4076_s12 }
 0x136   : > { %2989 = vmatprep.subr.bf16.mxu1 %v3549_v4  ;;  %2898 = vmatprep.subr.mxu0 %v3551_v7 }
 0x137   : > { %2886 = vmatmul.mubr.msk.f32.vlgmr.msra.gmra.mrb[0].mxu0 %vm1084_vm2, %v4149_v11 }
 0x138   : > { %2900 = vmatprep.mubr.msk.f32.mxu0 %vm3550_vm1, %v3551_v7 }
 0x139   : > { %2991 = vmatpush3.bf16.msra.mxu1 %v2990_v15 }
 0x13a   : > { %2888 = vmatprep.subr.mxu1 %v3551_v7 }
 0x13c   : > { %2875 = vmatmul.mubr.msk.f32.vlgmr.msra.gmra.mrb[2].mxu1 %vm1084_vm2, %v4149_v11 }
 0x13d   : > { %2890 = vmatprep.mubr.msk.f32.mxu1 %vm3550_vm1, %v3551_v7 }
 0x207   : > { %v1154_v22 = vpop.f32.mrb[0].mxu1 }
 0x208   : > { %v2865_v23 = vpop.f32.mrb[1].mxu1  ;;  %v1155_v29 = vadd.f32 %v2759_v28, %v1154_v22 }
 0x20a   : > { %v1316_v31 = vpop.f32.mrb[0].mxu0 }
 0x20b   : > { %v4191_v32 = vadd.f32 %v2763_v30, %v1316_v31  ;;  %v2887_v33 = vpop.f32.mrb[1].mxu0 }
 0x20f   : > { %v1235_v25 = vpop.f32.mrb[2].mxu1 }
 0x210   : > { %v1236_v26 = vadd.f32 %v2761_v24, %v1235_v25  ;;  %v2876_v27 = vpop.f32.mrb[3].mxu1 }
 0x212   : > { %1653 = vrot.lane.b32.xlu1 %v1236_v26, %s3552_s16  ;;  %1485 = vrot.lane.b32.xlu0 %v1236_v26, %s3553_s22 }
 0x213   : > { %2889 = vmatpush3.xpose.msk.msra.mxu1 %vm1320_vm3, %v1236_v26 }
 0x214   : > { %2893 = vmatprep.subr.mxu1 %v3551_v7 }
 0x216   : > { %2891 = vmatmul.mubr.msk.f32.vlgmr.msra.gmra.mrb[4].mxu1 %vm1320_vm3, %v1155_v29  ;;  %1651 = vrot.lane.b32.xlu1 %v1155_v29, %s3552_s16 }
 0x217   : > { %1483 = vrot.lane.b32.xlu0 %v1155_v29, %s3553_s22  ;;  %2895 = vmatprep.mubr.msk.f32.mxu1 %vm3550_vm1, %v3551_v7 }
 0x218   : > { %2894 = vmatpush3.msra.mxu1 %v4191_v32 }
 0x219   : > { %2903 = vmatprep.subr.mxu1 %v3551_v7 }
 0x21a   : > { %1818 = vrot.lane.b32.xlu1 %v1155_v29, %s3554_s19 }
 0x21b   : > { %1820 = vrot.lane.b32.xlu0 %v1236_v26, %s3554_s19 }
 0x284   : > { %v1486_v34 = vpop.permute.xlu0 %1485  ;;  %v1654_v35 = vpop.permute.xlu1 %1653 }
 0x285   : > { %2899 = vmatpush3.xpose.msk.msra.mxu0 %vm1320_vm3, %v1486_v34 }
 0x286   : > { %2908 = vmatprep.subr.mxu0 %v3551_v7 }
 0x288   : > { %v1652_v37 = vpop.permute.xlu1 %1651 }
 0x289   : > { %v1484_v36 = vpop.permute.xlu0 %1483 }
 0x28a   : > { %2901 = vmatmul.mubr.msk.f32.vlgmr.msra.gmra.mrb[2].mxu0 %vm1320_vm3, %v1484_v36 }
 0x28b   : > { %2909 = vmatpush3.xpose.msk.msra.mxu0 %vm1320_vm3, %v1654_v35  ;;  %2910 = vmatprep.mubr.msk.f32.mxu0 %vm3550_vm1, %v3551_v7 }
 0x28c   : > { %2918 = vmatprep.subr.mxu0 %v3551_v7  ;;  %v1819_v39 = vpop.permute.xlu1 %1818 }
 0x28d   : > { %v1821_v38 = vpop.permute.xlu0 %1820 }
 0x28e   : > { %2911 = vmatmul.mubr.msk.f32.vlgmr.msra.gmra.mrb[4].mxu0 %vm1320_vm3, %v1652_v37 }
 0x28f   : > { %2919 = vmatpush3.xpose.msk.msra.mxu0 %vm1320_vm3, %v1821_v38  ;;  %2920 = vmatprep.mubr.msk.f32.mxu0 %vm3550_vm1, %v3551_v7 }
 0x290   : > { %2998 = vmatprep.subr.bf16.mxu0 %v3549_v4 }
 0x292   : > { %2921 = vmatmul.mubr.msk.f32.vlgmr.msra.gmra.mrb[6].mxu0 %vm1320_vm3, %v1819_v39  ;;  %v2002_v39 = vld [vmem:[%s4132_s24] sm:$0xff] }
 0x293   : > { %2936 = vmatprep.mubr.msk.f32.mxu0 %vm3550_vm1, %v3551_v7  ;;  %v2999_v41 = vpack.c.bf16 %v2003_v40, %v2002_v39 }
 0x295   : > { %3000 = vmatpush3.bf16.msra.mxu0 %v2999_v41 }
 0x296   : > { %3001 = vmatprep.subr.bf16.mxu0 %v3549_v4 }
 0x2e9   : > { %v1393_v43 = vpop.f32.mrb[4].mxu1 }
 0x2ea   : > { %v1397_v44 = vmul.f32 0.35355338, %v1393_v43  ;;  %v2892_v45 = vpop.f32.mrb[5].mxu1  ;;  %v2005_v43 = vld [vmem:[%s4132_s24 + $0x18] sm:$0xff] }
 0x2ec   : > { %v1398_v46 = vadd.f32 %v1397_v44, %v1072_v42 }
 0x2ee   : > { %v1399_v47 = vsel %vm1320_vm3, %v1398_v46, -inf }
 0x2ef   : > { %1400 = vmax.xlane.f32.xlu0 %v1399_v47 }
 0x35d   : > { %v1557_v48 = vpop.f32.mrb[2].mxu0 }
 0x35e   : > { %v1561_v49 = vmul.f32 0.35355338, %v1557_v48  ;;  %v2902_v50 = vpop.f32.mrb[3].mxu0 }
 0x360   : > { %v1562_v51 = vadd.f32 %v1561_v49, %v1072_v42 }
 0x361   : > { %v1725_v52 = vpop.f32.mrb[4].mxu0 }
 0x362   : > { %v1729_v53 = vmul.f32 0.35355338, %v1725_v52  ;;  %v2912_v54 = vpop.f32.mrb[5].mxu0  ;;  %v1563_v55 = vsel %vm1320_vm3, %v1562_v51, -inf }
 0x363   : > { %1564 = vmax.xlane.f32.xlu1 %v1563_v55 }
 0x364   : > { %v1730_v56 = vadd.f32 %v1729_v53, %v1072_v42 }
 0x365   : > { %v1892_v57 = vpop.f32.mrb[6].mxu0 }
 0x366   : > { %v1896_v58 = vmul.f32 0.35355338, %v1892_v57  ;;  %v2922_v59 = vpop.f32.mrb[7].mxu0  ;;  %v1731_v60 = vsel %vm1320_vm3, %v1730_v56, -inf  ;;  %v2777_v57 = vld [vmem:[%s4533_s23] ss:$0 sm:$0xff] }
 0x367   : > { %1732 = vmax.xlane.f32.xlu0 %v1731_v60  ;;  %s4543_s23 = sld [smem:[#allocation51_spill]] (!%p2787_p3) }
 0x368   : > { %v1897_v61 = vadd.f32 %v1896_v58, %v1072_v42  ;;  %v2004_v42 = vld [vmem:[%s4132_s24 + $0x10] sm:$0xff]  ;;  %s4536_s24 = sld [smem:[#allocation44_spill]] }
 0x369   : > { %v3002_v44 = vpack.c.bf16 %v2005_v43, %v2004_v42 }
 0x36a   : > { %v1898_v62 = vsel %vm1320_vm3, %v1897_v61, -inf }
 0x36b   : > { %1899 = vmax.xlane.f32.xlu0 %v1898_v62  ;;  %3003 = vmatpush3.bf16.msra.mxu0 %v3002_v44 }
 0x36c   : > { %3010 = vmatprep.subr.bf16.mxu0 %v3549_v4 }
 0x36e   : > { %s4537_s15 = scalar_lea.vmem %s4536_s24, %s4076_s12 }
 0x374   : > { %1575 = vrot.lane.b32.xlu1 %v4191_v32, %s3553_s22  ;;  %s4538_s22 = sld [smem:[#allocation46_spill]] }
 0x37c   : > { %v1401_v63 = vpop.xlane.xlu0 %1400 }
 0x37d   : > { %v1402_v0 = vsub.f32 %v1398_v46, %v1401_v63 }
 0x37f   : > { %v1403_v1 = vmul.f32 1.442695, %v1402_v0 }
 0x381   : > { %3180 = vpow2.f32 %v1403_v1 }
 0x38b   : > { %v3181_v2 = vpop.eup %3180 }
 0x38c   : > { %v1405_v3 = vsel %vm1320_vm3, %v3181_v2, 0.0 }
 0x398   : > { %1406 = vadd.xlane.f32.xlu1 %v1405_v3  ;;  %v2117_v3 = vld [vmem:[%s4134_s17] sm:$0xff] }
 0x3f0   : > { %v1565_v5 = vpop.xlane.xlu1 %1564 }
 0x3f1   : > { %v1566_v6 = vsub.f32 %v1562_v51, %v1565_v5  ;;  %v2118_v5 = vld [vmem:[%s4134_s17 + $0x8] sm:$0xff] }
 0x3f3   : > { %v1567_v8 = vmul.f32 1.442695, %v1566_v6  ;;  %v3005_v6 = vpack.c.bf16 %v2118_v5, %v2117_v3 }
 0x3f4   : > { %v1733_v9 = vpop.xlane.xlu0 %1732  ;;  %v1576_v22 = vpop.permute.xlu1 %1575 }
 0x3f5   : > { %3182 = vpow2.f32 %v1567_v8  ;;  %v1734_v10 = vsub.f32 %v1730_v56, %v1733_v9  ;;  %v2120_v8 = vld [vmem:[%s4134_s17 + $0x18] sm:$0xff] }
 0x3f7   : > { %v1735_v12 = vmul.f32 1.442695, %v1734_v10  ;;  %v2202_v10 = vld [vmem:[%s4120_s8] sm:$0xff] }
 0x3f8   : > { %v1900_v13 = vpop.xlane.xlu0 %1899 }
 0x3f9   : > { %3184 = vpow2.f32 %v1735_v12  ;;  %v1901_v14 = vsub.f32 %v1897_v61, %v1900_v13  ;;  %v2203_v12 = vld [vmem:[%s4120_s8 + $0x8] sm:$0xff]  ;;  %v2204_v13 = vld [vmem:[%s4120_s8 + $0x10] sm:$0xff] }
 0x3fb   : > { %v1902_v15 = vmul.f32 1.442695, %v1901_v14  ;;  %v3011_v14 = vpack.c.bf16 %v2203_v12, %v2202_v10 }
 0x3fd   : > { %3186 = vpow2.f32 %v1902_v15  ;;  %v2205_v15 = vld [vmem:[%s4120_s8 + $0x18] sm:$0xff] }
 0x3ff   : > { %v3183_v16 = vpop.eup %3182 }
 0x400   : > { %v1569_v17 = vsel %vm1320_vm3, %v3183_v16, 0.0 }
 0x401   : > { %1570 = vadd.xlane.f32.xlu0 %v1569_v17  ;;  %v2206_v17 = vld [vmem:[%s4120_s8 + $0x20] sm:$0xff] }
 0x403   : > { %v3185_v18 = vpop.eup %3184 }
 0x404   : > { %v1737_v19 = vsel %vm1320_vm3, %v3185_v18, 0.0 }
 0x405   : > { %1738 = vadd.xlane.f32.xlu1 %v1737_v19 }
 0x407   : > { %v3187_v20 = vpop.eup %3186 }
 0x408   : > { %v1904_v21 = vsel %vm1320_vm3, %v3187_v20, 0.0 }
 0x409   : > { %1905 = vadd.xlane.f32.xlu0 %v1904_v21 }
 0x416   : > { %1909 = vrot.lane.b32.xlu1 %v4191_v32, %s3554_s19  ;;  %s4539_s19 = scalar_lea.vmem %s4538_s22, %s4076_s12 }
 0x41f   : > { %1742 = vrot.lane.b32.xlu0 %v4191_v32, %s3552_s16 }
 0x425   : > { %v1407_v23 = vpop.xlane.xlu1 %1406 }
 0x426   : > { %3188 = vrcp.f32 %v1407_v23 }
 0x430   : > { %v3189_v24 = vpop.eup %3188 }
 0x431   : > { %v1409_v25 = vmul.f32 %v3189_v24, %v3181_v2  ;;  %v2779_v24 = vld [vmem:[%s4535_s6] ss:$0 sm:$0xff] }
 0x433   : > { %2896 = vmatmul.mubr.msk.f32.vlgmr.msra.gmra.mrb[6].mxu1 %vm1320_vm3, %v1409_v25 }
 0x434   : > { %2904 = vmatpush3.msra.mxu1 %v1576_v22  ;;  %2905 = vmatprep.mubr.msk.f32.mxu1 %vm3550_vm1, %v3551_v7 }
 0x435   : > { %2913 = vmatprep.subr.mxu1 %v3551_v7 }
 0x48e   : > { %v1571_v26 = vpop.xlane.xlu0 %1570 }
 0x48f   : > { %3190 = vrcp.f32 %v1571_v26  ;;  %v2780_v26 = vld [vmem:[%s4537_s15] ss:$0 sm:$0xff] }
 0x492   : > { %v1739_v27 = vpop.xlane.xlu1 %1738 }
 0x493   : > { %3192 = vrcp.f32 %v1739_v27 }
 0x496   : > { %v1906_v28 = vpop.xlane.xlu0 %1905  ;;  %v1910_v34 = vpop.permute.xlu1 %1909 }
 0x497   : > { %3194 = vrcp.f32 %v1906_v28  ;;  %v2208_v28 = vld [vmem:[%s4120_s8 + $0x30] sm:$0xff] }
 0x499   : > { %v3191_v29 = vpop.eup %3190 }
 0x49a   : > { %v1573_v30 = vmul.f32 %v3191_v29, %v3183_v16  ;;  %v1743_v31 = vpop.permute.xlu0 %1742  ;;  %v3014_v16 = vpack.c.bf16 %v2205_v15, %v2204_v13  ;;  %v2209_v29 = vld [vmem:[%s4120_s8 + $0x38] sm:$0xff] }
 0x49c   : > { %2906 = vmatmul.mubr.msk.f32.vlgmr.msra.gmra.mrb[8].mxu1 %vm1320_vm3, %v1573_v30  ;;  %v3020_v30 = vpack.c.bf16 %v2209_v29, %v2208_v28 }
 0x49d   : > { %v3193_v32 = vpop.eup %3192  ;;  %2914 = vmatpush3.msra.mxu1 %v1743_v31  ;;  %2915 = vmatprep.mubr.msk.f32.mxu1 %vm3550_vm1, %v3551_v7  ;;  %v2781_v31 = vld [vmem:[%s4539_s19] ss:$0 sm:$0xff] }
 0x49e   : > { %v1741_v33 = vmul.f32 %v3193_v32, %v3185_v18  ;;  %2923 = vmatprep.subr.mxu1 %v3551_v7  ;;  %v2207_v18 = vld [vmem:[%s4120_s8 + $0x28] sm:$0xff] }
 0x49f   : > { %v3017_v19 = vpack.c.bf16 %v2207_v18, %v2206_v17 }
 0x4a0   : > { %2916 = vmatmul.mubr.msk.f32.vlgmr.msra.gmra.mrb[10].mxu1 %vm1320_vm3, %v1741_v33 }
 0x4a1   : > { %v3195_v35 = vpop.eup %3194  ;;  %2924 = vmatpush3.msra.mxu1 %v1910_v34  ;;  %2925 = vmatprep.mubr.msk.f32.mxu1 %vm3550_vm1, %v3551_v7 }
 0x4a2   : > { %v1908_v36 = vmul.f32 %v3195_v35, %v3187_v20  ;;  %3004 = vmatprep.subr.bf16.mxu1 %v3549_v4 }
 0x4a4   : > { %2926 = vmatmul.mubr.msk.f32.vlgmr.msra.gmra.mrb[12].mxu1 %vm1320_vm3, %v1908_v36  ;;  %v2783_v36 = vld [vmem:[%s1049_s0] ss:$0 sm:$0xff] }
 0x4a5   : > { %2947 = vmatprep.mubr.msk.f32.mxu1 %vm3550_vm1, %v3551_v7  ;;  %3006 = vmatpush3.bf16.msra.mxu1 %v3005_v6 }
 0x4a6   : > { %3007 = vmatprep.subr.bf16.mxu1 %v3549_v4 }
 0x506   : > { %v1479_v37 = vpop.f32.mrb[6].mxu1 }
 0x507   : > { %v2897_v38 = vpop.f32.mrb[7].mxu1 }
 0x56f   : > { %v1647_v45 = vpop.f32.mrb[8].mxu1 }
 0x570   : > { %1986 = vrot.lane.b32.xlu1 %v1647_v45, %s3555_s30  ;;  %v2907_v46 = vpop.f32.mrb[9].mxu1 }
 0x573   : > { %v1814_v47 = vpop.f32.mrb[10].mxu1 }
 0x574   : > { %1990 = vrot.lane.b32.xlu0 %v1814_v47, %s3556_s28  ;;  %v2917_v48 = vpop.f32.mrb[11].mxu1 }
 0x577   : > { %v1981_v49 = vpop.f32.mrb[12].mxu1 }
 0x578   : > { %1994 = vrot.lane.b32.xlu1 %v1981_v49, %s3557_s1  ;;  %v2927_v50 = vpop.f32.mrb[13].mxu1 }
 0x5e2   : > { %v1987_v51 = vpop.permute.xlu1 %1986 }
 0x5e3   : > { %v1997_v53 = vsel %vm1320_vm3, %v1479_v37, %v1987_v51  ;;  %v2785_v51 = vld [vmem:[%s1052_s11] ss:$0 sm:$0xff] }
 0x5e6   : > { %v1991_v52 = vpop.permute.xlu0 %1990 }
 0x5e7   : > { %v1999_v54 = vsel %vm1998_vm4, %v1997_v53, %v1991_v52  ;;  %v2786_v53 = vld [vmem:[%s1055_s9] ss:$0 sm:$0xff] }
 0x5ea   : > { %v1995_v55 = vpop.permute.xlu1 %1994 }
 0x5eb   : > { %v2001_v56 = vsel %vm2000_vm5, %v1999_v54, %v1995_v55 }
 0x5ec   : > { %2937 = vmatmul.mubr.msk.f32.vlgmr.msra.gmra.mrb[8].mxu0 %vm1084_vm2, %v2001_v56  ;;  %v2326_v56 = vld [vmem:[%s4543_s23] sm:$0xff] (!%p2787_p3) }
 0x5ed   : > { %2966 = vmatprep.mubr.msk.f32.mxu0 %vm3550_vm1, %v3551_v7  ;;  %3012 = vmatpush3.bf16.msra.mxu0 %v3011_v14 }
 0x5ee   : > { %3013 = vmatprep.subr.bf16.mxu0 %v3549_v4 }
 0x5f1   : > { %3015 = vmatpush3.bf16.msra.mxu0 %v3014_v16 }
 0x5f2   : > { %3016 = vmatprep.subr.bf16.mxu0 %v3549_v4 }
 0x5f5   : > { %3018 = vmatpush3.bf16.msra.mxu0 %v3017_v19 }
 0x5f6   : > { %3019 = vmatprep.subr.bf16.mxu0 %v3549_v4 }
 0x5f9   : > { %3021 = vmatpush3.bf16.msra.mxu0 %v3020_v30 }
 0x6bf   : > { %v2082_v58 = vpop.f32.mrb[8].mxu0 }
 0x6c0   : > { %v2083_v59 = vadd.f32 %v2777_v57, %v2082_v58  ;;  %v2938_v60 = vpop.f32.mrb[9].mxu0  ;;  %v2327_v57 = vld [vmem:[%s4543_s23 + $0x8] sm:$0xff] (!%p2787_p3)  ;;  %v2328_v58 = vld [vmem:[%s4543_s23 + $0x10] sm:$0xff] (!%p2787_p3) }
 0x6c1   : > { %v3023_v60 = vpack.c.bf16 (!%p2787_p3), %v2327_v57, %v2326_v56 }
 0x6c2   : > { %v2086_v61 = vadd.f32 %v2083_v59, %v4149_v11  ;;  %v2119_v11 = vld [vmem:[%s4134_s17 + $0x10] sm:$0xff]  ;;  %v3558_v59 = vmov (!%p2787_p3), 0.0|0.0  }
 0x6c3   : > { %v3008_v9 = vpack.c.bf16 %v2120_v8, %v2119_v11  ;;  %3022 = vmatprep.subr.bf16.mxu0 (!%p2787_p3), %v3558_v59 }
 0x6c4   : > { %v2089_v62 = vsel %vm1084_vm2, %v2086_v61, 0.0 }
 0x6c5   : > { %2090 = vadd.xlane.f32.xlu0 %v2089_v62  ;;  %3009 = vmatpush3.bf16.msra.mxu1 %v3008_v9  ;;  %v3560_v62 = vmov (!%p2787_p3), 0.0  }
 0x752   : > { %v2091_v63 = vpop.xlane.xlu0 %2090 }
 0x753   : > { %v2093_v0 = vmul.f32 0.03125, %v2091_v63 }
 0x755   : > { %v2094_v7 = vsub.f32 %v2086_v61, %v2093_v0  ;;  %v2329_v61 = vld [vmem:[%s4543_s23 + $0x18] sm:$0xff] (!%p2787_p3)  ;;  %v2788_v0 = vld [vmem:[%s4544_s14] ss:$0 sm:$0xff] (!%p2787_p3) }
 0x756   : > { %v3026_v63 = vpack.c.bf16 (!%p2787_p3), %v2329_v61, %v2328_v58 }
 0x757   : > { %v2095_v1 = vmul.f32 %v2094_v7, %v2094_v7 }
 0x759   : > { %v2096_v2 = vsel %vm1084_vm2, %v2095_v1, 0.0 }
 0x75a   : > { %2097 = vadd.xlane.f32.xlu1 %v2096_v2 }
 0x7e7   : > { %v2098_v20 = vpop.xlane.xlu1 %2097 }
 0x7e8   : > { %v2099_v21 = vmul.f32 0.03125, %v2098_v20 }
 0x7ea   : > { %v2100_v22 = vadd.f32 1e-05, %v2099_v21 }
 0x7ec   : > { %3196 = vrsqrt.f32 %v2100_v22 }
 0x7f6   : > { %v3197_v23 = vpop.eup %3196 }
 0x7f7   : > { %v2102_v25 = vmul.f32 %v3197_v23, %v2094_v7 }
 0x7f9   : > { %v2109_v27 = vmul.f32 %v2779_v24, %v2102_v25 }
 0x7fb   : > { %v2116_v4 = vadd.f32 %v2780_v26, %v2109_v27 }
 0x7fd   : > { %2948 = vmatmul.mubr.msk.f32.vlgmr.msra.gmra.mrb[14].mxu1 %vm1084_vm2, %v2116_v4 }
 0x8d0   : > { %v2197_v32 = vpop.f32.mrb[14].mxu1 }
 0x8d1   : > { %v2198_v33 = vadd.f32 %v2781_v31, %v2197_v32  ;;  %v2949_v34 = vpop.f32.mrb[15].mxu1 }
 0x8d3   : > { %v2201_v35 = vmax.f32 %v2198_v33, 0.0 }
 0x8d5   : > { %2967 = vmatmul.mubr.msk.f32.vlgmr.msra.gmra.mrb[10].mxu0 %vm2217_vm6, %v2201_v35 }
 0x8d6   : > { %2977 = vmatprep.mubr.msk.f32.mxu0 (!%p2787_p3), %vm3559_vm7, %v3560_v62  ;;  %3024 = vmatpush3.bf16.msra.mxu0 (!%p2787_p3), %v3023_v60 }
 0x8d7   : > { %3025 = vmatprep.subr.bf16.mxu0 (!%p2787_p3), %v3558_v59 }
 0x8da   : > { %3027 = vmatpush3.bf16.msra.mxu0 (!%p2787_p3), %v3026_v63 }
 0x9a8   : > { %v2287_v37 = vpop.f32.mrb[10].mxu0 }
 0x9a9   : > { %v2288_v38 = vadd.f32 %v2783_v36, %v2287_v37  ;;  %v2968_v39 = vpop.f32.mrb[11].mxu0 }
 0x9ab   : > { %v2291_v40 = vadd.f32 %v2288_v38, %v2116_v4 }
 0x9ad   : > { %v2294_v41 = vsel %vm1084_vm2, %v2291_v40, 0.0 }
 0x9ae   : > { %2295 = vadd.xlane.f32.xlu0 %v2294_v41 }
 0xa3b   : > { %v2296_v42 = vpop.xlane.xlu0 %2295 }
 0xa3c   : > { %v2297_v43 = vmul.f32 0.03125, %v2296_v42 }
 0xa3e   : > { %v2298_v44 = vsub.f32 %v2291_v40, %v2297_v43 }
 0xa40   : > { %v2299_v45 = vmul.f32 %v2298_v44, %v2298_v44 }
 0xa42   : > { %v2300_v46 = vsel %vm1084_vm2, %v2299_v45, 0.0 }
 0xa43   : > { %2301 = vadd.xlane.f32.xlu0 %v2300_v46 }
 0xad0   : > { %v2302_v47 = vpop.xlane.xlu0 %2301 }
 0xad1   : > { %v2303_v48 = vmul.f32 0.03125, %v2302_v47 }
 0xad3   : > { %v2304_v49 = vadd.f32 1e-05, %v2303_v48 }
 0xad5   : > { %3198 = vrsqrt.f32 %v2304_v49 }
 0xadf   : > { %v3199_v50 = vpop.eup %3198 }
 0xae0   : > { %v2306_v52 = vmul.f32 %v3199_v50, %v2298_v44  ;;  %2325 = sbr.rel (%p2787_p3) target bundleno = 3005 (0xbbd), region = 140 }
 0xae2   : > { %v2313_v54 = vmul.f32 %v2785_v51, %v2306_v52 }
 0xae4   : > { %v2320_v55 = vadd.f32 %v2786_v53, %v2313_v54 }
 0xae6   : > { %2321 = vst.msk [vmem:[#allocation2] sm:$0xff] %vm1084_vm2, %v2320_v55  ;;  %2978 = vmatmul.mubr.msk.f32.vlgmr.msra.gmra.mrb[0].mxu0 (!%p2787_p3), %vm1084_vm2, %v2320_v55 }
 0xbb9   : > { %v2406_v7 = vpop.f32.mrb[0].mxu0 }
 0xbba   : > { %v2407_v1 = vadd.f32 %v2788_v0, %v2406_v7  ;;  %v2979_v2 = vpop.f32.mrb[1].mxu0 }
 0xbbc   : > { %2410 = vst [vmem:[%s1011_s3] sm:$0xff] %v2407_v1 }
 0xbbd PF: > { %s4545_s5 = sld [smem:[#allocation23_spill]]  ;;  %s4546_s24 = sld [smem:[#allocation21_spill]] }
 0xbbe   : > { %s4547_s15 = sld [smem:[#allocation31_spill]]  ;;  %s4548_s19 = sld [smem:[#allocation53_spill]] }
 0xbbf   : > { %s2425_s26 = sshll.u32 %s1011_s3, 4  ;;  %s3561_s4 = smov [#allocation13]   ;;  %s2426_s26 = int_to_ptr.vmem [resolvable:$true] %s2425_s26 }
 0xbc0   : > { %s3408_s8 = scalar_lea.vmem %s2426_s26, 128  ;;  %s3412_s30 = sshll.u32 %s3561_s4, 4  ;;  %s3413_s30 = int_to_ptr.vmem [resolvable:$false] %s3412_s30 }
 0xbc1   : > { %p3409_p5 = scmp.ne.s32.totalorder %s2426_s26, %s3408_s8  ;;  %s3414_s28 = scalar_lea.vmem %s3413_s30, 256 }
 0xbc2   : > { %p3415_p10 = scmp.lt.s32.totalorder %s2426_s26, %s3413_s30  ;;  %p3416_p13 = scmp.lt.s32.totalorder %s3414_s28, %s3408_s8 }
 0xbc3   : > { %s2791_s25 = sshll.u32 %s4545_s5, 7  ;;  %s4549_s20 = sand.u32 1, %s4546_s24  }
 0xbc4   : > { %s4335_s7 = scalar_lea.hbm %s4548_s19, %s2791_s25  ;;  %s2412_s0 = scalar_lea.sflag [#allocation5], %s4549_s20 }
 0xbc5   : > { %p4550_p2 = scmp.ne.s32.totalorder %s4547_s15, 0  ;;  %p3417_p9 = por %p3416_p13, %p3415_p10 }
 0xbc7   : > { %p3410_p8 = pnand %p3409_p5, %p4550_p2 }
 0xbc9   : > { %p3411_p1 = pneg %p3410_p8 }
 0xbcb   : > { %p3418_p6 = pnand %p3417_p9, %p3411_p1 }
 0xbcd   : > { %3421 = shalt.err (!%p3418_p6)
}
 0xbce   : > { %s3422_s21 = scalar_lea.hbm %s4335_s7, 128  ;;  %s3426_s18 = scalar_lea.hbm %s4548_s19, 256 }
 0xbcf   : > { %p3423_p7 = scmp.ne.s32.totalorder %s4335_s7, %s3422_s21  ;;  %p3427_p11 = scmp.lt.u32.totalorder %s4335_s7, %s4548_s19 }
 0xbd0   : > { %p3428_p4 = scmp.lt.u32.totalorder %s3426_s18, %s3422_s21  ;;  %p3430_p5 = scmp.lt.u32.totalorder %s3422_s21, %s4335_s7 }
 0xbd1   : > { %p3424_p12 = pnand %p3423_p7, %p4550_p2 }
 0xbd2   : > { %p3429_p3 = por %p3428_p4, %p3427_p11 }
 0xbd3   : > { %p3425_p0 = pneg %p3424_p12 }
 0xbd4   : > { %p3431_p8 = por %p3430_p5, %p3429_p3 }
 0xbd6   : > { %p3432_p1 = pnand %p3431_p8, %p3425_p0 }
 0xbd8   : > { %3435 = shalt.err (!%p3432_p1)
}
 0xbd9   : > { %3044 = dma.vmem_to_hbm [thread:$0]  (%p4550_p2), %s2426_s26, 128, %s4335_s7, %s2412_s0  }
 0xbda PF: > { %s4551_s13 = sld [smem:[#allocation26_spill]]  ;;  %s4552_s11 = sld [smem:[#allocation20_spill]] }
 0xbdb   : > { %s4553_s27 = sld [smem:[#allocation32_spill]] }
 0xbe0   : > { %p3076_p10 = scmp.ge.s32.totalorder %s4551_s13, 2  ;;  %s2437_s12 = sand.u32 1, %s4552_s11  }
 0xbe1   : > { %p4554_p13 = scmp.ne.s32.totalorder %s4553_s27, 0  ;;  %s2438_s9 = scalar_lea.sflag [#allocation5], %s2437_s12 }
 0xbe3   : > { %p3070_p9 = pnand %p3076_p10, %p4554_p13 }
 0xbe5   : > { %3493 = dma.done.wait (!%p3070_p9), %s2438_s9, 128  }
 0xbe6   : > { %3495 = vsyncadd (!%p3070_p9), %s2438_s9, 4294967168  ;;  %s38_s5 = sadd.s32 1, %s4551_s13   ;;  %s4555_s2 = sld [smem:[#allocation18_spill]] }
 0xbe7   : > { %p35_p6 = scmp.ge.s32.totalorder %s38_s5, 6   ;;  %s4556_s25 = sld [smem:[#allocation19_spill]] }
 0xbe8   : > { %s4557_s26 = sld [smem:[#allocation29_spill]]  ;;  %s4558_s27 = sld [smem:[#allocation21_spill]] }
 0xbe9   : > { %s4559_s3 = sld [smem:[#allocation22_spill]]  ;;  %s4560_s28 = sld [smem:[#allocation30_spill]] }
 0xbea   : > { %s4561_s29 = sld [smem:[#allocation24_spill]]  ;;  %s4562_s0 = sld [smem:[#allocation25_spill]] }
 0xbeb   : > { %s4563_s4 = sld [smem:[#allocation27_spill]]  ;;  %s4564_s30 = sld [smem:[#allocation28_spill]] }
 0xbec   :  { %37 = sbr.rel (!%p35_p6) target bundleno = 32 (0x20), region = 252 }
 0xbf3   :  { %2443 = vsyncpa [#allocation4], 1 }
 0xbf4   :  { %2445 = vsyncpa [#allocation4 + $0x1], 1 }
 0xbf5   :  { %2446 = vsyncpa [#allocation7], 1 }
 0xbf6   :  { %2447 = vsyncpa [#allocation5], 1 }
 0xbf7   :  { %2449 = vsyncpa [#allocation5 + $0x1], 1 }

</bundles_post_ra>
